<compile_context>
chip_gen: v7x
topology: tpu7x:2x2x1
jax: 0.10.0
libtpu: 0.0.40
codegen_flags: <defaults>
</compile_context>

<pallas_src>
import jax
import jax.numpy as jnp
from jax.experimental import pallas as pl
from jax.experimental.pallas import tpu as pltpu

# ----------------------- sizes (small, synthetic) -----------------------
N_USER = 8
N_ITEM = 8
EMB_DIM = 16
IN_DIM = 16
OUT_DIM = 16
NUM_HEADS = 2
HEAD_OUT = OUT_DIM // NUM_HEADS      # merge == 'linear'
KQ_DIM = 8
C_DIM = 8
K_LENGTH = 1                         # model has K_length+1 hop layers
K_RUN = 2                            # forward(k=2)
OUT_PAD = 128                        # lane-dense output slab width

NTYPES = ("user", "item")
N_OF = {"user": N_USER, "item": N_ITEM}
# (srctype, etype, dsttype) -- two edge types into each node type so the
# graph-level attention softmax is non-trivial.
CANONICAL_ETYPES = (
    ("user", "ui1", "item"),
    ("user", "ui2", "item"),
    ("item", "iu1", "user"),
    ("item", "iu2", "user"),
)

# trace-time structure: dst ntype -> [(src ntype, etype index), ...]
DST_GROUPS = {}
for _ei, (_s, _e, _d) in enumerate(CANONICAL_ETYPES):
    DST_GROUPS.setdefault(_d, []).append((_s, _ei))

_VMEM = pl.BlockSpec(memory_space=pltpu.MemorySpace.VMEM)

LEAKY_SLOPE = 0.01
NEG_INF = -1e30

# ------------------- packed-input slab layout (rows, 128) -------------------
SLAB_W = 128
MASK_BLOCK = 8                                   # rows per adjacency mask
R_EMB_U = 0                                      # rows 0:8,    lanes 0:16
R_EMB_I = R_EMB_U + N_USER                       # rows 8:16,   lanes 0:16
R_MASK = R_EMB_I + N_ITEM                        # rows 16:48,  lanes 0:8
R_VT = R_MASK + MASK_BLOCK * len(CANONICAL_ETYPES)      # rows 48:80,  lanes 0:4
R_WKQ = R_VT + IN_DIM * K_RUN                    # rows 80:112, lanes 0:32
R_WHEAD = R_WKQ + IN_DIM * K_RUN                 # rows 112:176, lanes 0:16
R_BCOMB = R_WHEAD + NUM_HEADS * IN_DIM * K_RUN   # rows 176:178, lanes 0:16
SLAB_ROWS = ((R_BCOMB + K_RUN + 7) // 8) * 8     # 184


# ------------------------- fused Pallas kernel ----------------------------
def cgnn_fused_kernel(slab_ref, out_ref):
    """Full 2-hop ContextGNN forward; one packed slab resident in VMEM."""
    emb_user = slab_ref[R_EMB_U:R_EMB_U + N_USER, :EMB_DIM]
    emb_item = slab_ref[R_EMB_I:R_EMB_I + N_ITEM, :EMB_DIM]
    masks = []                                    # additive masks: 0 / -1e30
    for ei, (s, _e, d) in enumerate(CANONICAL_ETYPES):
        r0 = R_MASK + MASK_BLOCK * ei
        masks.append(slab_ref[r0:r0 + N_OF[d], :N_OF[s]])

    h = {"user": emb_user, "item": emb_item}
    inv_sqrt_kq = jnp.float32(1.0 / (KQ_DIM ** 0.5))

    for hop in range(K_RUN):
        vt = slab_ref[R_VT + IN_DIM * hop:
                      R_VT + IN_DIM * (hop + 1), :2 * NUM_HEADS]       # (D, 4)
        wkq = slab_ref[R_WKQ + IN_DIM * hop:
                       R_WKQ + IN_DIM * (hop + 1),
                       :2 * NUM_HEADS * KQ_DIM]                        # (D, 32)
        whead = slab_ref[R_WHEAD + NUM_HEADS * IN_DIM * hop:
                         R_WHEAD + NUM_HEADS * IN_DIM * (hop + 1),
                         :OUT_DIM]                                     # (32, 16)
        bcomb = slab_ref[R_BCOMB + hop:R_BCOMB + hop + 1, :OUT_DIM]    # (1, 16)

        # graph_aggregation ('mean'); dropout p=0 -> identity.  (2, D)
        gf = jnp.concatenate(
            [jnp.mean(h[nt], axis=0, keepdims=True) for nt in NTYPES], axis=0)
        # batched k/q projections for both heads: one matmul per hop. (2, 32)
        kq = jnp.dot(gf, wkq, preferred_element_type=jnp.float32)

        # batched attention-logit pieces: one matmul per ntype. (N, 4)
        # cols [0:H) = src-half per head, [H:2H) = dst-half per head.
        S = {nt: jnp.dot(h[nt], vt, preferred_element_type=jnp.float32)
             for nt in NTYPES}
        SsrcT = {nt: jnp.transpose(S[nt][:, :NUM_HEADS]) for nt in NTYPES}

        head_agg = {}
        for dst in NTYPES:
            dst_idx = NTYPES.index(dst)
            group = DST_GROUPS[dst]
            Nd = N_OF[dst]

            # graph-attention softmax over edge types into `dst` (per head)
            g_att = []
            for head in range(NUM_HEADS):
                q0 = NUM_HEADS * KQ_DIM + head * KQ_DIM
                q_vec = kq[dst_idx:dst_idx + 1, q0:q0 + KQ_DIM]
                scores = []
                for (src, _ei) in group:
                    s_i = NTYPES.index(src)
                    k_vec = kq[s_i:s_i + 1, head * KQ_DIM:(head + 1) * KQ_DIM]
                    scores.append(jnp.sum(k_vec * q_vec, keepdims=True)
                                  * inv_sqrt_kq)
                m = scores[0]
                for sc in scores[1:]:
                    m = jnp.maximum(m, sc)
                exps = [jnp.exp(sc - m) for sc in scores]
                denom = exps[0]
                for ex in exps[1:]:
                    denom = denom + ex
                inv = pl.reciprocal(denom, approx=True)
                g_att.append([ex * inv for ex in exps])

            # etypes sharing a src are combined; BOTH heads share h[src] so a
            # single (2*Nd, Ns) @ (Ns, D) matmul covers them.
            by_src = {}
            for gi, (src, ei) in enumerate(group):
                by_src.setdefault(src, []).append((gi, ei))

            contrib = [None] * NUM_HEADS
            for src, items in by_src.items():
                alphas = []
                for head in range(NUM_HEADS):
                    e_base = (S[dst][:, NUM_HEADS + head:NUM_HEADS + head + 1]
                              + SsrcT[src][head:head + 1, :])          # (Nd, Ns)
                    e_leaky = jnp.maximum(e_base, LEAKY_SLOPE * e_base)
                    comb = None
                    for (gi, ei) in items:
                        e = e_leaky + masks[ei]          # additive -1e30 mask
                        mrow = jnp.max(e, axis=1, keepdims=True)
                        p = jnp.exp(e - mrow)            # masked terms -> 0
                        dsum = jnp.sum(p, axis=1, keepdims=True)
                        alpha = p * pl.reciprocal(dsum, approx=True)
                        wa = g_att[head][gi] * alpha
                        comb = wa if comb is None else comb + wa
                    alphas.append(comb)
                stacked = jnp.concatenate(alphas, axis=0)        # (H*Nd, Ns)
                msg = jnp.dot(stacked, h[src],
                              preferred_element_type=jnp.float32)  # (H*Nd, D)
                for head in range(NUM_HEADS):
                    part = msg[head * Nd:(head + 1) * Nd, :]
                    contrib[head] = (part if contrib[head] is None
                                     else contrib[head] + part)
            head_agg[dst] = contrib

        # fused per-head fc + multi-head 'linear' merge: one matmul per hop
        # over user+item rows and both heads (weights folded in wrapper).
        cat_rows = [jnp.concatenate(head_agg[nt], axis=1) for nt in NTYPES]
        cat_all = jnp.concatenate(cat_rows, axis=0)               # (Nu+Ni, H*D)
        merged = jnp.dot(cat_all, whead,
                         preferred_element_type=jnp.float32) + bcomb
        new_h = {}
        off = 0
        for nt in NTYPES:
            new_h[nt] = merged[off:off + N_OF[nt], :]
            off += N_OF[nt]
        # enable_add_init: residual with the primary embedding table
        new_h["user"] = new_h["user"] + emb_user
        h = new_h

    # ONE full-width 128-lane store; result in lanes [0, OUT_DIM)
    pad = jnp.zeros((N_USER, OUT_PAD - OUT_DIM), jnp.float32)
    out_ref[...] = jnp.concatenate([h["user"], pad], axis=1)


# ------------- wrapper: fold + pack everything into one slab ---------------
def pack_inputs(params, graph):
    """Exact algebraic folds + packing into one lane-dense (rows, 128) slab."""
    slab = jnp.zeros((SLAB_ROWS, SLAB_W), jnp.float32)
    slab = slab.at[R_EMB_U:R_EMB_U + N_USER, :EMB_DIM].set(params["primary_emb"])
    slab = slab.at[R_EMB_I:R_EMB_I + N_ITEM, :EMB_DIM].set(params["aux_emb_item"])

    for ei, (_s, e, _d) in enumerate(CANONICAL_ETYPES):
        adj = graph[e]
        mask_add = jnp.where(adj > 0, 0.0, NEG_INF).astype(jnp.float32)
        r0 = R_MASK + MASK_BLOCK * ei
        slab = slab.at[r0:r0 + adj.shape[0], :adj.shape[1]].set(mask_add)

    for hop, hop_p in enumerate(params["hops"]):
        wm = hop_p["merge_W"]                       # (OUT, OUT)
        bsum = hop_p["merge_b"]                     # (1, OUT)
        vsrc_cols, vdst_cols, wk_cols, wq_cols, whead_rows = [], [], [], [], []
        for hi, hp in enumerate(hop_p["heads"]):
            # fold c_linear into the attn_fc halves
            vsrc_cols.append(hp["Wc"] @ hp["a_src"])          # (D, 1)
            vdst_cols.append(hp["Wc"] @ hp["a_dst"])          # (D, 1)
            wk_cols.append(hp["Wk"])                          # (D, KQ)
            wq_cols.append(hp["Wq"])                          # (D, KQ)
            wm_slice = wm[hi * HEAD_OUT:(hi + 1) * HEAD_OUT, :]   # (HO, OUT)
            whead_rows.append(hp["Wfc"] @ wm_slice)           # (D, OUT)
            bsum = bsum + hp["bfc"] @ wm_slice
        vt = jnp.concatenate(vsrc_cols + vdst_cols, axis=1)        # (D, 2H)
        wkq = jnp.concatenate(wk_cols + wq_cols, axis=1)           # (D, 2H*KQ)
        whead = jnp.concatenate(whead_rows, axis=0)                # (H*D, OUT)

        slab = slab.at[R_VT + IN_DIM * hop:
                       R_VT + IN_DIM * (hop + 1), :2 * NUM_HEADS].set(vt)
        slab = slab.at[R_WKQ + IN_DIM * hop:
                       R_WKQ + IN_DIM * (hop + 1),
                       :2 * NUM_HEADS * KQ_DIM].set(wkq)
        slab = slab.at[R_WHEAD + NUM_HEADS * IN_DIM * hop:
                       R_WHEAD + NUM_HEADS * IN_DIM * (hop + 1),
                       :OUT_DIM].set(whead)
        slab = slab.at[R_BCOMB + hop, :OUT_DIM].set(bsum[0])
    return slab


def context_gnn_forward_pallas(params, graph):
    slab = pack_inputs(params, graph)
    out = pl.pallas_call(
        cgnn_fused_kernel,
        out_shape=jax.ShapeDtypeStruct((N_USER, OUT_PAD), jnp.float32),
        in_specs=[_VMEM],
        out_specs=_VMEM,
    )(slab)
    return out[:, :OUT_DIM]


# -------------------------- pure-JAX reference -----------------------------
def cgnn_agg_ref(g_a, h_src, h_dst, wc, a_src, a_dst, adj):
    chs = h_src @ wc
    chd = h_dst @ wc
    s_src = chs @ a_src
    s_dst = chd @ a_dst
    e = s_dst + s_src.T
    e = jnp.where(e > 0, e, 0.01 * e)
    e = jnp.where(adj > 0, e, jnp.float32(-1e30))
    m = jnp.max(e, axis=1, keepdims=True)
    p = jnp.exp(e - m) * adj
    alpha = p / jnp.maximum(jnp.sum(p, axis=1, keepdims=True), 1e-30)
    return g_a * (alpha @ h_src)


def cgnn_layer_ref(head_p, h_dict, graph):
    gf = {nt: jnp.mean(h_dict[nt], axis=0) for nt in NTYPES}
    g_A = {}
    for dst in NTYPES:
        q_h = gf[dst] @ head_p["Wq"]
        et_list, scores = [], []
        for (s, e, d) in CANONICAL_ETYPES:
            if d != dst:
                continue
            k_h = gf[s] @ head_p["Wk"]
            scores.append(jnp.sum(k_h * q_h) / jnp.sqrt(jnp.float32(KQ_DIM)))
            et_list.append(e)
        att = jax.nn.softmax(jnp.stack(scores))
        for i, e in enumerate(et_list):
            g_A[e] = att[i]
    agg = {nt: jnp.zeros_like(h_dict[nt]) for nt in NTYPES}
    for (s, e, d) in CANONICAL_ETYPES:
        agg[d] = agg[d] + cgnn_agg_ref(g_A[e], h_dict[s], h_dict[d],
                                       head_p["Wc"], head_p["a_src"],
                                       head_p["a_dst"], graph[e])
    return {nt: agg[nt] @ head_p["Wfc"] + head_p["bfc"] for nt in NTYPES}


def multihead_ref(hop_p, h_dict, graph):
    head_outs = [cgnn_layer_ref(hp, h_dict, graph) for hp in hop_p["heads"]]
    out = {}
    for nt in NTYPES:
        cat = jnp.concatenate([ho[nt] for ho in head_outs], axis=1)
        out[nt] = cat @ hop_p["merge_W"] + hop_p["merge_b"]
    return out


def context_gnn_forward_ref(params, graph, k):
    h_dict = {"user": params["primary_emb"], "item": params["aux_emb_item"]}
    for hop in range(k):
        h_dict = multihead_ref(params["hops"][hop], h_dict, graph)
        h_dict = dict(h_dict)
        h_dict["user"] = h_dict["user"] + params["primary_emb"]
    return h_dict["user"]


# -------------------------- deterministic setup ----------------------------
def init_params(key):
    n_keys = 2 + (K_LENGTH + 1) * (NUM_HEADS * 7 + 2)
    keys = jax.random.split(key, n_keys)
    counter = [0]

    def nxt(shape, scale):
        k = keys[counter[0]]
        counter[0] += 1
        return scale * jax.random.normal(k, shape, dtype=jnp.float32)

    params = {
        "primary_emb": nxt((N_USER, EMB_DIM), 1.0),   # nn.Embedding weight
        "aux_emb_item": nxt((N_ITEM, EMB_DIM), 1.0),  # auxiliary nn.Embedding
        "hops": [],
    }
    for _ in range(K_LENGTH + 1):
        heads = []
        for _ in range(NUM_HEADS):
            heads.append({
                "Wc": nxt((IN_DIM, C_DIM), 0.2),       # c_linear (no bias)
                "a_src": nxt((C_DIM, 1), 0.2),         # attn_fc weight, src half
                "a_dst": nxt((C_DIM, 1), 0.2),         # attn_fc weight, dst half
                "Wq": nxt((IN_DIM, KQ_DIM), 0.2),      # q_linear (no bias)
                "Wk": nxt((IN_DIM, KQ_DIM), 0.2),      # k_linear (no bias)
                "Wfc": nxt((IN_DIM, HEAD_OUT), 0.2),   # per-head fc
                "bfc": nxt((1, HEAD_OUT), 0.1),
            })
        params["hops"].append({
            "heads": heads,
            "merge_W": nxt((OUT_DIM, OUT_DIM), 0.2),   # MultiHeadCGNN merge fc
            "merge_b": nxt((1, OUT_DIM), 0.1),
        })
    return params


def make_graph(key):
    ks = jax.random.split(key, 4)

    def adj(k, nd, ns):
        a = (jax.random.uniform(k, (nd, ns)) < 0.4).astype(jnp.float32)
        idx = jnp.arange(nd)
        return a.at[idx, idx % ns].set(1.0)   # every dst node has >=1 in-edge

    return {
        "ui1": adj(ks[0], N_ITEM, N_USER),
        "ui2": adj(ks[1], N_ITEM, N_USER),
        "iu1": adj(ks[2], N_USER, N_ITEM),
        "iu2": adj(ks[3], N_USER, N_ITEM),
    }


if __name__ == "__main__":
    key = jax.random.PRNGKey(0)
    kp, kg = jax.random.split(key)
    params = init_params(kp)
    graph = make_graph(kg)

    out = context_gnn_forward_pallas(params, graph)
    out = jax.block_until_ready(out)

    ref = context_gnn_forward_ref(params, graph, K_RUN)
    ref = jax.block_until_ready(ref)

    assert out.shape == (N_USER, OUT_DIM), out.shape
    err = float(jnp.max(jnp.abs(out - ref)))
    assert err < 5e-2, f"Pallas vs reference mismatch: max abs err {err}"
    print("KERNEL_OK")
</pallas_src>

<mosaic_0001>
module attributes {stable_mosaic.version = 11 : i64} {
  func.func @cgnn_fused_kernel(%arg0: memref<184x128xf32, #tpu.memory_space<vmem>>, %arg1: memref<8x128xf32, #tpu.memory_space<vmem>>) attributes {dimension_semantics = [], scalar_prefetch = 0 : i64, scratch_operands = 0 : i64, tpu.core_type = #tpu.core_type<tc>} {
    %c0 = arith.constant 0 : index
    %c0_0 = arith.constant 0 : index
    %0 = vector.load %arg0[%c0, %c0_0] : memref<184x128xf32, #tpu.memory_space<vmem>>, vector<8x16xf32>
    %c8 = arith.constant 8 : index
    %c0_1 = arith.constant 0 : index
    %1 = vector.load %arg0[%c8, %c0_1] : memref<184x128xf32, #tpu.memory_space<vmem>>, vector<8x16xf32>
    %c16 = arith.constant 16 : index
    %c0_2 = arith.constant 0 : index
    %2 = vector.load %arg0[%c16, %c0_2] : memref<184x128xf32, #tpu.memory_space<vmem>>, vector<8x8xf32>
    %c24 = arith.constant 24 : index
    %c0_3 = arith.constant 0 : index
    %3 = vector.load %arg0[%c24, %c0_3] : memref<184x128xf32, #tpu.memory_space<vmem>>, vector<8x8xf32>
    %c32 = arith.constant 32 : index
    %c0_4 = arith.constant 0 : index
    %4 = vector.load %arg0[%c32, %c0_4] : memref<184x128xf32, #tpu.memory_space<vmem>>, vector<8x8xf32>
    %c40 = arith.constant 40 : index
    %c0_5 = arith.constant 0 : index
    %5 = vector.load %arg0[%c40, %c0_5] : memref<184x128xf32, #tpu.memory_space<vmem>>, vector<8x8xf32>
    %c48 = arith.constant 48 : index
    %c0_6 = arith.constant 0 : index
    %6 = vector.load %arg0[%c48, %c0_6] : memref<184x128xf32, #tpu.memory_space<vmem>>, vector<16x4xf32>
    %c80 = arith.constant 80 : index
    %c0_7 = arith.constant 0 : index
    %7 = vector.load %arg0[%c80, %c0_7] : memref<184x128xf32, #tpu.memory_space<vmem>>, vector<16x32xf32>
    %c112 = arith.constant 112 : index
    %c0_8 = arith.constant 0 : index
    %8 = vector.load %arg0[%c112, %c0_8] : memref<184x128xf32, #tpu.memory_space<vmem>>, vector<32x16xf32>
    %c176 = arith.constant 176 : index
    %c0_9 = arith.constant 0 : index
    %9 = vector.load %arg0[%c176, %c0_9] : memref<184x128xf32, #tpu.memory_space<vmem>>, vector<1x16xf32>
    %cst = arith.constant dense<0.000000e+00> : vector<16xf32>
    %10 = vector.multi_reduction <add>, %0, %cst [0] : vector<8x16xf32> to vector<16xf32>
    %11 = vector.shape_cast %10 : vector<16xf32> to vector<1x16xf32>
    %cst_10 = arith.constant 8.000000e+00 : f32
    %12 = vector.broadcast %cst_10 : f32 to vector<1x16xf32>
    %13 = arith.divf %11, %12 : vector<1x16xf32>
    %cst_11 = arith.constant dense<0.000000e+00> : vector<16xf32>
    %14 = vector.multi_reduction <add>, %1, %cst_11 [0] : vector<8x16xf32> to vector<16xf32>
    %15 = vector.shape_cast %14 : vector<16xf32> to vector<1x16xf32>
    %cst_12 = arith.constant 8.000000e+00 : f32
    %16 = vector.broadcast %cst_12 : f32 to vector<1x16xf32>
    %17 = arith.divf %15, %16 : vector<1x16xf32>
    %18 = tpu.concatenate %13, %17 in 0 : vector<1x16xf32>, vector<1x16xf32> -> vector<2x16xf32>
    %cst_13 = arith.constant dense<0.000000e+00> : vector<2x32xf32>
    %19 = tpu.matmul %18, %7, %cst_13 {dimension_numbers = #tpu.dot_dimension_numbers<[1], [0], [0], [1], [0, 0, 1, 1], [], []>} : vector<2x16xf32>, vector<16x32xf32>, vector<2x32xf32> -> vector<2x32xf32>
    %cst_14 = arith.constant dense<0.000000e+00> : vector<8x4xf32>
    %20 = tpu.matmul %0, %6, %cst_14 {dimension_numbers = #tpu.dot_dimension_numbers<[1], [0], [0], [1], [0, 0, 1, 1], [], []>} : vector<8x16xf32>, vector<16x4xf32>, vector<8x4xf32> -> vector<8x4xf32>
    %cst_15 = arith.constant dense<0.000000e+00> : vector<8x4xf32>
    %21 = tpu.matmul %1, %6, %cst_15 {dimension_numbers = #tpu.dot_dimension_numbers<[1], [0], [0], [1], [0, 0, 1, 1], [], []>} : vector<8x16xf32>, vector<16x4xf32>, vector<8x4xf32> -> vector<8x4xf32>
    %22 = vector.extract_strided_slice %20 {offsets = [0, 0], sizes = [8, 2], strides = [1, 1]} : vector<8x4xf32> to vector<8x2xf32>
    %23 = tpu.transpose %22, [1, 0] : vector<8x2xf32> -> vector<2x8xf32>
    %24 = vector.extract_strided_slice %21 {offsets = [0, 0], sizes = [8, 2], strides = [1, 1]} : vector<8x4xf32> to vector<8x2xf32>
    %25 = tpu.transpose %24, [1, 0] : vector<8x2xf32> -> vector<2x8xf32>
    %26 = vector.extract_strided_slice %19 {offsets = [0, 16], sizes = [1, 8], strides = [1, 1]} : vector<2x32xf32> to vector<1x8xf32>
    %27 = vector.extract_strided_slice %19 {offsets = [1, 0], sizes = [1, 8], strides = [1, 1]} : vector<2x32xf32> to vector<1x8xf32>
    %28 = arith.mulf %27, %26 : vector<1x8xf32>
    %29 = vector.shape_cast %28 : vector<1x8xf32> to vector<1x1x8xf32>
    %cst_16 = arith.constant dense<0.000000e+00> : vector<1xf32>
    %30 = vector.multi_reduction <add>, %29, %cst_16 [1, 2] : vector<1x1x8xf32> to vector<1xf32>
    %31 = vector.shape_cast %30 : vector<1xf32> to vector<1x1x1xf32>
    %32 = vector.extract %31[0, 0, 0] : f32 from vector<1x1x1xf32>
    %33 = vector.broadcast %32 : f32 to vector<1x1xf32>
    %cst_17 = arith.constant 0.353553385 : f32
    %34 = vector.broadcast %cst_17 : f32 to vector<1x1xf32>
    %35 = arith.mulf %33, %34 : vector<1x1xf32>
    %36 = vector.extract_strided_slice %19 {offsets = [1, 0], sizes = [1, 8], strides = [1, 1]} : vector<2x32xf32> to vector<1x8xf32>
    %37 = arith.mulf %36, %26 : vector<1x8xf32>
    %38 = vector.shape_cast %37 : vector<1x8xf32> to vector<1x1x8xf32>
    %cst_18 = arith.constant dense<0.000000e+00> : vector<1xf32>
    %39 = vector.multi_reduction <add>, %38, %cst_18 [1, 2] : vector<1x1x8xf32> to vector<1xf32>
    %40 = vector.shape_cast %39 : vector<1xf32> to vector<1x1x1xf32>
    %41 = vector.extract %40[0, 0, 0] : f32 from vector<1x1x1xf32>
    %42 = vector.broadcast %41 : f32 to vector<1x1xf32>
    %cst_19 = arith.constant 0.353553385 : f32
    %43 = vector.broadcast %cst_19 : f32 to vector<1x1xf32>
    %44 = arith.mulf %42, %43 : vector<1x1xf32>
    %45 = arith.maximumf %35, %44 : vector<1x1xf32>
    %46 = arith.subf %35, %45 : vector<1x1xf32>
    %47 = math.exp %46 : vector<1x1xf32>
    %48 = arith.subf %44, %45 : vector<1x1xf32>
    %49 = math.exp %48 : vector<1x1xf32>
    %50 = arith.addf %47, %49 : vector<1x1xf32>
    %51 = tpu.reciprocal %50 {approx = true} : vector<1x1xf32> -> vector<1x1xf32>
    %52 = arith.mulf %47, %51 : vector<1x1xf32>
    %53 = arith.mulf %49, %51 : vector<1x1xf32>
    %54 = vector.extract_strided_slice %19 {offsets = [0, 24], sizes = [1, 8], strides = [1, 1]} : vector<2x32xf32> to vector<1x8xf32>
    %55 = vector.extract_strided_slice %19 {offsets = [1, 8], sizes = [1, 8], strides = [1, 1]} : vector<2x32xf32> to vector<1x8xf32>
    %56 = arith.mulf %55, %54 : vector<1x8xf32>
    %57 = vector.shape_cast %56 : vector<1x8xf32> to vector<1x1x8xf32>
    %cst_20 = arith.constant dense<0.000000e+00> : vector<1xf32>
    %58 = vector.multi_reduction <add>, %57, %cst_20 [1, 2] : vector<1x1x8xf32> to vector<1xf32>
    %59 = vector.shape_cast %58 : vector<1xf32> to vector<1x1x1xf32>
    %60 = vector.extract %59[0, 0, 0] : f32 from vector<1x1x1xf32>
    %61 = vector.broadcast %60 : f32 to vector<1x1xf32>
    %cst_21 = arith.constant 0.353553385 : f32
    %62 = vector.broadcast %cst_21 : f32 to vector<1x1xf32>
    %63 = arith.mulf %61, %62 : vector<1x1xf32>
    %64 = vector.extract_strided_slice %19 {offsets = [1, 8], sizes = [1, 8], strides = [1, 1]} : vector<2x32xf32> to vector<1x8xf32>
    %65 = arith.mulf %64, %54 : vector<1x8xf32>
    %66 = vector.shape_cast %65 : vector<1x8xf32> to vector<1x1x8xf32>
    %cst_22 = arith.constant dense<0.000000e+00> : vector<1xf32>
    %67 = vector.multi_reduction <add>, %66, %cst_22 [1, 2] : vector<1x1x8xf32> to vector<1xf32>
    %68 = vector.shape_cast %67 : vector<1xf32> to vector<1x1x1xf32>
    %69 = vector.extract %68[0, 0, 0] : f32 from vector<1x1x1xf32>
    %70 = vector.broadcast %69 : f32 to vector<1x1xf32>
    %cst_23 = arith.constant 0.353553385 : f32
    %71 = vector.broadcast %cst_23 : f32 to vector<1x1xf32>
    %72 = arith.mulf %70, %71 : vector<1x1xf32>
    %73 = arith.maximumf %63, %72 : vector<1x1xf32>
    %74 = arith.subf %63, %73 : vector<1x1xf32>
    %75 = math.exp %74 : vector<1x1xf32>
    %76 = arith.subf %72, %73 : vector<1x1xf32>
    %77 = math.exp %76 : vector<1x1xf32>
    %78 = arith.addf %75, %77 : vector<1x1xf32>
    %79 = tpu.reciprocal %78 {approx = true} : vector<1x1xf32> -> vector<1x1xf32>
    %80 = arith.mulf %75, %79 : vector<1x1xf32>
    %81 = arith.mulf %77, %79 : vector<1x1xf32>
    %82 = vector.extract_strided_slice %20 {offsets = [0, 2], sizes = [8, 1], strides = [1, 1]} : vector<8x4xf32> to vector<8x1xf32>
    %83 = vector.extract_strided_slice %25 {offsets = [0, 0], sizes = [1, 8], strides = [1, 1]} : vector<2x8xf32> to vector<1x8xf32>
    %84 = vector.broadcast %82 : vector<8x1xf32> to vector<8x8xf32>
    %85 = vector.broadcast %83 : vector<1x8xf32> to vector<8x8xf32>
    %86 = arith.addf %84, %85 : vector<8x8xf32>
    %cst_24 = arith.constant 0.00999999977 : f32
    %87 = vector.broadcast %cst_24 : f32 to vector<8x8xf32>
    %88 = arith.mulf %87, %86 : vector<8x8xf32>
    %89 = arith.maximumf %86, %88 : vector<8x8xf32>
    %90 = arith.addf %89, %4 : vector<8x8xf32>
    %cst_25 = arith.constant dense<0xFF800000> : vector<8xf32>
    %91 = vector.multi_reduction <maximumf>, %90, %cst_25 [1] : vector<8x8xf32> to vector<8xf32>
    %92 = vector.shape_cast %91 : vector<8xf32> to vector<8x1xf32>
    %93 = vector.broadcast %92 : vector<8x1xf32> to vector<8x8xf32>
    %94 = arith.subf %90, %93 : vector<8x8xf32>
    %95 = math.exp %94 : vector<8x8xf32>
    %cst_26 = arith.constant dense<0.000000e+00> : vector<8xf32>
    %96 = vector.multi_reduction <add>, %95, %cst_26 [1] : vector<8x8xf32> to vector<8xf32>
    %97 = vector.shape_cast %96 : vector<8xf32> to vector<8x1xf32>
    %98 = tpu.reciprocal %97 {approx = true} : vector<8x1xf32> -> vector<8x1xf32>
    %99 = vector.broadcast %98 : vector<8x1xf32> to vector<8x8xf32>
    %100 = arith.mulf %95, %99 : vector<8x8xf32>
    %101 = vector.broadcast %52 : vector<1x1xf32> to vector<8x8xf32>
    %102 = arith.mulf %101, %100 : vector<8x8xf32>
    %103 = arith.addf %89, %5 : vector<8x8xf32>
    %cst_27 = arith.constant dense<0xFF800000> : vector<8xf32>
    %104 = vector.multi_reduction <maximumf>, %103, %cst_27 [1] : vector<8x8xf32> to vector<8xf32>
    %105 = vector.shape_cast %104 : vector<8xf32> to vector<8x1xf32>
    %106 = vector.broadcast %105 : vector<8x1xf32> to vector<8x8xf32>
    %107 = arith.subf %103, %106 : vector<8x8xf32>
    %108 = math.exp %107 : vector<8x8xf32>
    %cst_28 = arith.constant dense<0.000000e+00> : vector<8xf32>
    %109 = vector.multi_reduction <add>, %108, %cst_28 [1] : vector<8x8xf32> to vector<8xf32>
    %110 = vector.shape_cast %109 : vector<8xf32> to vector<8x1xf32>
    %111 = tpu.reciprocal %110 {approx = true} : vector<8x1xf32> -> vector<8x1xf32>
    %112 = vector.broadcast %111 : vector<8x1xf32> to vector<8x8xf32>
    %113 = arith.mulf %108, %112 : vector<8x8xf32>
    %114 = vector.broadcast %53 : vector<1x1xf32> to vector<8x8xf32>
    %115 = arith.mulf %114, %113 : vector<8x8xf32>
    %116 = arith.addf %102, %115 : vector<8x8xf32>
    %117 = vector.extract_strided_slice %20 {offsets = [0, 3], sizes = [8, 1], strides = [1, 1]} : vector<8x4xf32> to vector<8x1xf32>
    %118 = vector.extract_strided_slice %25 {offsets = [1, 0], sizes = [1, 8], strides = [1, 1]} : vector<2x8xf32> to vector<1x8xf32>
    %119 = vector.broadcast %117 : vector<8x1xf32> to vector<8x8xf32>
    %120 = vector.broadcast %118 : vector<1x8xf32> to vector<8x8xf32>
    %121 = arith.addf %119, %120 : vector<8x8xf32>
    %cst_29 = arith.constant 0.00999999977 : f32
    %122 = vector.broadcast %cst_29 : f32 to vector<8x8xf32>
    %123 = arith.mulf %122, %121 : vector<8x8xf32>
    %124 = arith.maximumf %121, %123 : vector<8x8xf32>
    %125 = arith.addf %124, %4 : vector<8x8xf32>
    %cst_30 = arith.constant dense<0xFF800000> : vector<8xf32>
    %126 = vector.multi_reduction <maximumf>, %125, %cst_30 [1] : vector<8x8xf32> to vector<8xf32>
    %127 = vector.shape_cast %126 : vector<8xf32> to vector<8x1xf32>
    %128 = vector.broadcast %127 : vector<8x1xf32> to vector<8x8xf32>
    %129 = arith.subf %125, %128 : vector<8x8xf32>
    %130 = math.exp %129 : vector<8x8xf32>
    %cst_31 = arith.constant dense<0.000000e+00> : vector<8xf32>
    %131 = vector.multi_reduction <add>, %130, %cst_31 [1] : vector<8x8xf32> to vector<8xf32>
    %132 = vector.shape_cast %131 : vector<8xf32> to vector<8x1xf32>
    %133 = tpu.reciprocal %132 {approx = true} : vector<8x1xf32> -> vector<8x1xf32>
    %134 = vector.broadcast %133 : vector<8x1xf32> to vector<8x8xf32>
    %135 = arith.mulf %130, %134 : vector<8x8xf32>
    %136 = vector.broadcast %80 : vector<1x1xf32> to vector<8x8xf32>
    %137 = arith.mulf %136, %135 : vector<8x8xf32>
    %138 = arith.addf %124, %5 : vector<8x8xf32>
    %cst_32 = arith.constant dense<0xFF800000> : vector<8xf32>
    %139 = vector.multi_reduction <maximumf>, %138, %cst_32 [1] : vector<8x8xf32> to vector<8xf32>
    %140 = vector.shape_cast %139 : vector<8xf32> to vector<8x1xf32>
    %141 = vector.broadcast %140 : vector<8x1xf32> to vector<8x8xf32>
    %142 = arith.subf %138, %141 : vector<8x8xf32>
    %143 = math.exp %142 : vector<8x8xf32>
    %cst_33 = arith.constant dense<0.000000e+00> : vector<8xf32>
    %144 = vector.multi_reduction <add>, %143, %cst_33 [1] : vector<8x8xf32> to vector<8xf32>
    %145 = vector.shape_cast %144 : vector<8xf32> to vector<8x1xf32>
    %146 = tpu.reciprocal %145 {approx = true} : vector<8x1xf32> -> vector<8x1xf32>
    %147 = vector.broadcast %146 : vector<8x1xf32> to vector<8x8xf32>
    %148 = arith.mulf %143, %147 : vector<8x8xf32>
    %149 = vector.broadcast %81 : vector<1x1xf32> to vector<8x8xf32>
    %150 = arith.mulf %149, %148 : vector<8x8xf32>
    %151 = arith.addf %137, %150 : vector<8x8xf32>
    %152 = tpu.concatenate %116, %151 in 0 : vector<8x8xf32>, vector<8x8xf32> -> vector<16x8xf32>
    %cst_34 = arith.constant dense<0.000000e+00> : vector<16x16xf32>
    %153 = tpu.matmul %152, %1, %cst_34 {dimension_numbers = #tpu.dot_dimension_numbers<[1], [0], [0], [1], [0, 0, 1, 1], [], []>} : vector<16x8xf32>, vector<8x16xf32>, vector<16x16xf32> -> vector<16x16xf32>
    %154 = vector.extract_strided_slice %153 {offsets = [0, 0], sizes = [8, 16], strides = [1, 1]} : vector<16x16xf32> to vector<8x16xf32>
    %155 = vector.extract_strided_slice %153 {offsets = [8, 0], sizes = [8, 16], strides = [1, 1]} : vector<16x16xf32> to vector<8x16xf32>
    %156 = vector.extract_strided_slice %19 {offsets = [1, 16], sizes = [1, 8], strides = [1, 1]} : vector<2x32xf32> to vector<1x8xf32>
    %157 = vector.extract_strided_slice %19 {offsets = [0, 0], sizes = [1, 8], strides = [1, 1]} : vector<2x32xf32> to vector<1x8xf32>
    %158 = arith.mulf %157, %156 : vector<1x8xf32>
    %159 = vector.shape_cast %158 : vector<1x8xf32> to vector<1x1x8xf32>
    %cst_35 = arith.constant dense<0.000000e+00> : vector<1xf32>
    %160 = vector.multi_reduction <add>, %159, %cst_35 [1, 2] : vector<1x1x8xf32> to vector<1xf32>
    %161 = vector.shape_cast %160 : vector<1xf32> to vector<1x1x1xf32>
    %162 = vector.extract %161[0, 0, 0] : f32 from vector<1x1x1xf32>
    %163 = vector.broadcast %162 : f32 to vector<1x1xf32>
    %cst_36 = arith.constant 0.353553385 : f32
    %164 = vector.broadcast %cst_36 : f32 to vector<1x1xf32>
    %165 = arith.mulf %163, %164 : vector<1x1xf32>
    %166 = vector.extract_strided_slice %19 {offsets = [0, 0], sizes = [1, 8], strides = [1, 1]} : vector<2x32xf32> to vector<1x8xf32>
    %167 = arith.mulf %166, %156 : vector<1x8xf32>
    %168 = vector.shape_cast %167 : vector<1x8xf32> to vector<1x1x8xf32>
    %cst_37 = arith.constant dense<0.000000e+00> : vector<1xf32>
    %169 = vector.multi_reduction <add>, %168, %cst_37 [1, 2] : vector<1x1x8xf32> to vector<1xf32>
    %170 = vector.shape_cast %169 : vector<1xf32> to vector<1x1x1xf32>
    %171 = vector.extract %170[0, 0, 0] : f32 from vector<1x1x1xf32>
    %172 = vector.broadcast %171 : f32 to vector<1x1xf32>
    %cst_38 = arith.constant 0.353553385 : f32
    %173 = vector.broadcast %cst_38 : f32 to vector<1x1xf32>
    %174 = arith.mulf %172, %173 : vector<1x1xf32>
    %175 = arith.maximumf %165, %174 : vector<1x1xf32>
    %176 = arith.subf %165, %175 : vector<1x1xf32>
    %177 = math.exp %176 : vector<1x1xf32>
    %178 = arith.subf %174, %175 : vector<1x1xf32>
    %179 = math.exp %178 : vector<1x1xf32>
    %180 = arith.addf %177, %179 : vector<1x1xf32>
    %181 = tpu.reciprocal %180 {approx = true} : vector<1x1xf32> -> vector<1x1xf32>
    %182 = arith.mulf %177, %181 : vector<1x1xf32>
    %183 = arith.mulf %179, %181 : vector<1x1xf32>
    %184 = vector.extract_strided_slice %19 {offsets = [1, 24], sizes = [1, 8], strides = [1, 1]} : vector<2x32xf32> to vector<1x8xf32>
    %185 = vector.extract_strided_slice %19 {offsets = [0, 8], sizes = [1, 8], strides = [1, 1]} : vector<2x32xf32> to vector<1x8xf32>
    %186 = arith.mulf %185, %184 : vector<1x8xf32>
    %187 = vector.shape_cast %186 : vector<1x8xf32> to vector<1x1x8xf32>
    %cst_39 = arith.constant dense<0.000000e+00> : vector<1xf32>
    %188 = vector.multi_reduction <add>, %187, %cst_39 [1, 2] : vector<1x1x8xf32> to vector<1xf32>
    %189 = vector.shape_cast %188 : vector<1xf32> to vector<1x1x1xf32>
    %190 = vector.extract %189[0, 0, 0] : f32 from vector<1x1x1xf32>
    %191 = vector.broadcast %190 : f32 to vector<1x1xf32>
    %cst_40 = arith.constant 0.353553385 : f32
    %192 = vector.broadcast %cst_40 : f32 to vector<1x1xf32>
    %193 = arith.mulf %191, %192 : vector<1x1xf32>
    %194 = vector.extract_strided_slice %19 {offsets = [0, 8], sizes = [1, 8], strides = [1, 1]} : vector<2x32xf32> to vector<1x8xf32>
    %195 = arith.mulf %194, %184 : vector<1x8xf32>
    %196 = vector.shape_cast %195 : vector<1x8xf32> to vector<1x1x8xf32>
    %cst_41 = arith.constant dense<0.000000e+00> : vector<1xf32>
    %197 = vector.multi_reduction <add>, %196, %cst_41 [1, 2] : vector<1x1x8xf32> to vector<1xf32>
    %198 = vector.shape_cast %197 : vector<1xf32> to vector<1x1x1xf32>
    %199 = vector.extract %198[0, 0, 0] : f32 from vector<1x1x1xf32>
    %200 = vector.broadcast %199 : f32 to vector<1x1xf32>
    %cst_42 = arith.constant 0.353553385 : f32
    %201 = vector.broadcast %cst_42 : f32 to vector<1x1xf32>
    %202 = arith.mulf %200, %201 : vector<1x1xf32>
    %203 = arith.maximumf %193, %202 : vector<1x1xf32>
    %204 = arith.subf %193, %203 : vector<1x1xf32>
    %205 = math.exp %204 : vector<1x1xf32>
    %206 = arith.subf %202, %203 : vector<1x1xf32>
    %207 = math.exp %206 : vector<1x1xf32>
    %208 = arith.addf %205, %207 : vector<1x1xf32>
    %209 = tpu.reciprocal %208 {approx = true} : vector<1x1xf32> -> vector<1x1xf32>
    %210 = arith.mulf %205, %209 : vector<1x1xf32>
    %211 = arith.mulf %207, %209 : vector<1x1xf32>
    %212 = vector.extract_strided_slice %21 {offsets = [0, 2], sizes = [8, 1], strides = [1, 1]} : vector<8x4xf32> to vector<8x1xf32>
    %213 = vector.extract_strided_slice %23 {offsets = [0, 0], sizes = [1, 8], strides = [1, 1]} : vector<2x8xf32> to vector<1x8xf32>
    %214 = vector.broadcast %212 : vector<8x1xf32> to vector<8x8xf32>
    %215 = vector.broadcast %213 : vector<1x8xf32> to vector<8x8xf32>
    %216 = arith.addf %214, %215 : vector<8x8xf32>
    %cst_43 = arith.constant 0.00999999977 : f32
    %217 = vector.broadcast %cst_43 : f32 to vector<8x8xf32>
    %218 = arith.mulf %217, %216 : vector<8x8xf32>
    %219 = arith.maximumf %216, %218 : vector<8x8xf32>
    %220 = arith.addf %219, %2 : vector<8x8xf32>
    %cst_44 = arith.constant dense<0xFF800000> : vector<8xf32>
    %221 = vector.multi_reduction <maximumf>, %220, %cst_44 [1] : vector<8x8xf32> to vector<8xf32>
    %222 = vector.shape_cast %221 : vector<8xf32> to vector<8x1xf32>
    %223 = vector.broadcast %222 : vector<8x1xf32> to vector<8x8xf32>
    %224 = arith.subf %220, %223 : vector<8x8xf32>
    %225 = math.exp %224 : vector<8x8xf32>
    %cst_45 = arith.constant dense<0.000000e+00> : vector<8xf32>
    %226 = vector.multi_reduction <add>, %225, %cst_45 [1] : vector<8x8xf32> to vector<8xf32>
    %227 = vector.shape_cast %226 : vector<8xf32> to vector<8x1xf32>
    %228 = tpu.reciprocal %227 {approx = true} : vector<8x1xf32> -> vector<8x1xf32>
    %229 = vector.broadcast %228 : vector<8x1xf32> to vector<8x8xf32>
    %230 = arith.mulf %225, %229 : vector<8x8xf32>
    %231 = vector.broadcast %182 : vector<1x1xf32> to vector<8x8xf32>
    %232 = arith.mulf %231, %230 : vector<8x8xf32>
    %233 = arith.addf %219, %3 : vector<8x8xf32>
    %cst_46 = arith.constant dense<0xFF800000> : vector<8xf32>
    %234 = vector.multi_reduction <maximumf>, %233, %cst_46 [1] : vector<8x8xf32> to vector<8xf32>
    %235 = vector.shape_cast %234 : vector<8xf32> to vector<8x1xf32>
    %236 = vector.broadcast %235 : vector<8x1xf32> to vector<8x8xf32>
    %237 = arith.subf %233, %236 : vector<8x8xf32>
    %238 = math.exp %237 : vector<8x8xf32>
    %cst_47 = arith.constant dense<0.000000e+00> : vector<8xf32>
    %239 = vector.multi_reduction <add>, %238, %cst_47 [1] : vector<8x8xf32> to vector<8xf32>
    %240 = vector.shape_cast %239 : vector<8xf32> to vector<8x1xf32>
    %241 = tpu.reciprocal %240 {approx = true} : vector<8x1xf32> -> vector<8x1xf32>
    %242 = vector.broadcast %241 : vector<8x1xf32> to vector<8x8xf32>
    %243 = arith.mulf %238, %242 : vector<8x8xf32>
    %244 = vector.broadcast %183 : vector<1x1xf32> to vector<8x8xf32>
    %245 = arith.mulf %244, %243 : vector<8x8xf32>
    %246 = arith.addf %232, %245 : vector<8x8xf32>
    %247 = vector.extract_strided_slice %21 {offsets = [0, 3], sizes = [8, 1], strides = [1, 1]} : vector<8x4xf32> to vector<8x1xf32>
    %248 = vector.extract_strided_slice %23 {offsets = [1, 0], sizes = [1, 8], strides = [1, 1]} : vector<2x8xf32> to vector<1x8xf32>
    %249 = vector.broadcast %247 : vector<8x1xf32> to vector<8x8xf32>
    %250 = vector.broadcast %248 : vector<1x8xf32> to vector<8x8xf32>
    %251 = arith.addf %249, %250 : vector<8x8xf32>
    %cst_48 = arith.constant 0.00999999977 : f32
    %252 = vector.broadcast %cst_48 : f32 to vector<8x8xf32>
    %253 = arith.mulf %252, %251 : vector<8x8xf32>
    %254 = arith.maximumf %251, %253 : vector<8x8xf32>
    %255 = arith.addf %254, %2 : vector<8x8xf32>
    %cst_49 = arith.constant dense<0xFF800000> : vector<8xf32>
    %256 = vector.multi_reduction <maximumf>, %255, %cst_49 [1] : vector<8x8xf32> to vector<8xf32>
    %257 = vector.shape_cast %256 : vector<8xf32> to vector<8x1xf32>
    %258 = vector.broadcast %257 : vector<8x1xf32> to vector<8x8xf32>
    %259 = arith.subf %255, %258 : vector<8x8xf32>
    %260 = math.exp %259 : vector<8x8xf32>
    %cst_50 = arith.constant dense<0.000000e+00> : vector<8xf32>
    %261 = vector.multi_reduction <add>, %260, %cst_50 [1] : vector<8x8xf32> to vector<8xf32>
    %262 = vector.shape_cast %261 : vector<8xf32> to vector<8x1xf32>
    %263 = tpu.reciprocal %262 {approx = true} : vector<8x1xf32> -> vector<8x1xf32>
    %264 = vector.broadcast %263 : vector<8x1xf32> to vector<8x8xf32>
    %265 = arith.mulf %260, %264 : vector<8x8xf32>
    %266 = vector.broadcast %210 : vector<1x1xf32> to vector<8x8xf32>
    %267 = arith.mulf %266, %265 : vector<8x8xf32>
    %268 = arith.addf %254, %3 : vector<8x8xf32>
    %cst_51 = arith.constant dense<0xFF800000> : vector<8xf32>
    %269 = vector.multi_reduction <maximumf>, %268, %cst_51 [1] : vector<8x8xf32> to vector<8xf32>
    %270 = vector.shape_cast %269 : vector<8xf32> to vector<8x1xf32>
    %271 = vector.broadcast %270 : vector<8x1xf32> to vector<8x8xf32>
    %272 = arith.subf %268, %271 : vector<8x8xf32>
    %273 = math.exp %272 : vector<8x8xf32>
    %cst_52 = arith.constant dense<0.000000e+00> : vector<8xf32>
    %274 = vector.multi_reduction <add>, %273, %cst_52 [1] : vector<8x8xf32> to vector<8xf32>
    %275 = vector.shape_cast %274 : vector<8xf32> to vector<8x1xf32>
    %276 = tpu.reciprocal %275 {approx = true} : vector<8x1xf32> -> vector<8x1xf32>
    %277 = vector.broadcast %276 : vector<8x1xf32> to vector<8x8xf32>
    %278 = arith.mulf %273, %277 : vector<8x8xf32>
    %279 = vector.broadcast %211 : vector<1x1xf32> to vector<8x8xf32>
    %280 = arith.mulf %279, %278 : vector<8x8xf32>
    %281 = arith.addf %267, %280 : vector<8x8xf32>
    %282 = tpu.concatenate %246, %281 in 0 : vector<8x8xf32>, vector<8x8xf32> -> vector<16x8xf32>
    %cst_53 = arith.constant dense<0.000000e+00> : vector<16x16xf32>
    %283 = tpu.matmul %282, %0, %cst_53 {dimension_numbers = #tpu.dot_dimension_numbers<[1], [0], [0], [1], [0, 0, 1, 1], [], []>} : vector<16x8xf32>, vector<8x16xf32>, vector<16x16xf32> -> vector<16x16xf32>
    %284 = vector.extract_strided_slice %283 {offsets = [0, 0], sizes = [8, 16], strides = [1, 1]} : vector<16x16xf32> to vector<8x16xf32>
    %285 = vector.extract_strided_slice %283 {offsets = [8, 0], sizes = [8, 16], strides = [1, 1]} : vector<16x16xf32> to vector<8x16xf32>
    %286 = tpu.concatenate %154, %155 in 1 : vector<8x16xf32>, vector<8x16xf32> -> vector<8x32xf32>
    %287 = tpu.concatenate %284, %285 in 1 : vector<8x16xf32>, vector<8x16xf32> -> vector<8x32xf32>
    %288 = tpu.concatenate %286, %287 in 0 : vector<8x32xf32>, vector<8x32xf32> -> vector<16x32xf32>
    %cst_54 = arith.constant dense<0.000000e+00> : vector<16x16xf32>
    %289 = tpu.matmul %288, %8, %cst_54 {dimension_numbers = #tpu.dot_dimension_numbers<[1], [0], [0], [1], [0, 0, 1, 1], [], []>} : vector<16x32xf32>, vector<32x16xf32>, vector<16x16xf32> -> vector<16x16xf32>
    %290 = vector.broadcast %9 : vector<1x16xf32> to vector<16x16xf32>
    %291 = arith.addf %289, %290 : vector<16x16xf32>
    %292 = vector.extract_strided_slice %291 {offsets = [0, 0], sizes = [8, 16], strides = [1, 1]} : vector<16x16xf32> to vector<8x16xf32>
    %293 = vector.extract_strided_slice %291 {offsets = [8, 0], sizes = [8, 16], strides = [1, 1]} : vector<16x16xf32> to vector<8x16xf32>
    %294 = arith.addf %292, %0 : vector<8x16xf32>
    %c64 = arith.constant 64 : index
    %c0_55 = arith.constant 0 : index
    %295 = vector.load %arg0[%c64, %c0_55] : memref<184x128xf32, #tpu.memory_space<vmem>>, vector<16x4xf32>
    %c96 = arith.constant 96 : index
    %c0_56 = arith.constant 0 : index
    %296 = vector.load %arg0[%c96, %c0_56] : memref<184x128xf32, #tpu.memory_space<vmem>>, vector<16x32xf32>
    %c144 = arith.constant 144 : index
    %c0_57 = arith.constant 0 : index
    %297 = vector.load %arg0[%c144, %c0_57] : memref<184x128xf32, #tpu.memory_space<vmem>>, vector<32x16xf32>
    %c177 = arith.constant 177 : index
    %c0_58 = arith.constant 0 : index
    %298 = vector.load %arg0[%c177, %c0_58] : memref<184x128xf32, #tpu.memory_space<vmem>>, vector<1x16xf32>
    %cst_59 = arith.constant dense<0.000000e+00> : vector<16xf32>
    %299 = vector.multi_reduction <add>, %294, %cst_59 [0] : vector<8x16xf32> to vector<16xf32>
    %300 = vector.shape_cast %299 : vector<16xf32> to vector<1x16xf32>
    %cst_60 = arith.constant 8.000000e+00 : f32
    %301 = vector.broadcast %cst_60 : f32 to vector<1x16xf32>
    %302 = arith.divf %300, %301 : vector<1x16xf32>
    %cst_61 = arith.constant dense<0.000000e+00> : vector<16xf32>
    %303 = vector.multi_reduction <add>, %293, %cst_61 [0] : vector<8x16xf32> to vector<16xf32>
    %304 = vector.shape_cast %303 : vector<16xf32> to vector<1x16xf32>
    %cst_62 = arith.constant 8.000000e+00 : f32
    %305 = vector.broadcast %cst_62 : f32 to vector<1x16xf32>
    %306 = arith.divf %304, %305 : vector<1x16xf32>
    %307 = tpu.concatenate %302, %306 in 0 : vector<1x16xf32>, vector<1x16xf32> -> vector<2x16xf32>
    %cst_63 = arith.constant dense<0.000000e+00> : vector<2x32xf32>
    %308 = tpu.matmul %307, %296, %cst_63 {dimension_numbers = #tpu.dot_dimension_numbers<[1], [0], [0], [1], [0, 0, 1, 1], [], []>} : vector<2x16xf32>, vector<16x32xf32>, vector<2x32xf32> -> vector<2x32xf32>
    %cst_64 = arith.constant dense<0.000000e+00> : vector<8x4xf32>
    %309 = tpu.matmul %294, %295, %cst_64 {dimension_numbers = #tpu.dot_dimension_numbers<[1], [0], [0], [1], [0, 0, 1, 1], [], []>} : vector<8x16xf32>, vector<16x4xf32>, vector<8x4xf32> -> vector<8x4xf32>
    %cst_65 = arith.constant dense<0.000000e+00> : vector<8x4xf32>
    %310 = tpu.matmul %293, %295, %cst_65 {dimension_numbers = #tpu.dot_dimension_numbers<[1], [0], [0], [1], [0, 0, 1, 1], [], []>} : vector<8x16xf32>, vector<16x4xf32>, vector<8x4xf32> -> vector<8x4xf32>
    %311 = vector.extract_strided_slice %309 {offsets = [0, 0], sizes = [8, 2], strides = [1, 1]} : vector<8x4xf32> to vector<8x2xf32>
    %312 = tpu.transpose %311, [1, 0] : vector<8x2xf32> -> vector<2x8xf32>
    %313 = vector.extract_strided_slice %310 {offsets = [0, 0], sizes = [8, 2], strides = [1, 1]} : vector<8x4xf32> to vector<8x2xf32>
    %314 = tpu.transpose %313, [1, 0] : vector<8x2xf32> -> vector<2x8xf32>
    %315 = vector.extract_strided_slice %308 {offsets = [0, 16], sizes = [1, 8], strides = [1, 1]} : vector<2x32xf32> to vector<1x8xf32>
    %316 = vector.extract_strided_slice %308 {offsets = [1, 0], sizes = [1, 8], strides = [1, 1]} : vector<2x32xf32> to vector<1x8xf32>
    %317 = arith.mulf %316, %315 : vector<1x8xf32>
    %318 = vector.shape_cast %317 : vector<1x8xf32> to vector<1x1x8xf32>
    %cst_66 = arith.constant dense<0.000000e+00> : vector<1xf32>
    %319 = vector.multi_reduction <add>, %318, %cst_66 [1, 2] : vector<1x1x8xf32> to vector<1xf32>
    %320 = vector.shape_cast %319 : vector<1xf32> to vector<1x1x1xf32>
    %321 = vector.extract %320[0, 0, 0] : f32 from vector<1x1x1xf32>
    %322 = vector.broadcast %321 : f32 to vector<1x1xf32>
    %cst_67 = arith.constant 0.353553385 : f32
    %323 = vector.broadcast %cst_67 : f32 to vector<1x1xf32>
    %324 = arith.mulf %322, %323 : vector<1x1xf32>
    %325 = vector.extract_strided_slice %308 {offsets = [1, 0], sizes = [1, 8], strides = [1, 1]} : vector<2x32xf32> to vector<1x8xf32>
    %326 = arith.mulf %325, %315 : vector<1x8xf32>
    %327 = vector.shape_cast %326 : vector<1x8xf32> to vector<1x1x8xf32>
    %cst_68 = arith.constant dense<0.000000e+00> : vector<1xf32>
    %328 = vector.multi_reduction <add>, %327, %cst_68 [1, 2] : vector<1x1x8xf32> to vector<1xf32>
    %329 = vector.shape_cast %328 : vector<1xf32> to vector<1x1x1xf32>
    %330 = vector.extract %329[0, 0, 0] : f32 from vector<1x1x1xf32>
    %331 = vector.broadcast %330 : f32 to vector<1x1xf32>
    %cst_69 = arith.constant 0.353553385 : f32
    %332 = vector.broadcast %cst_69 : f32 to vector<1x1xf32>
    %333 = arith.mulf %331, %332 : vector<1x1xf32>
    %334 = arith.maximumf %324, %333 : vector<1x1xf32>
    %335 = arith.subf %324, %334 : vector<1x1xf32>
    %336 = math.exp %335 : vector<1x1xf32>
    %337 = arith.subf %333, %334 : vector<1x1xf32>
    %338 = math.exp %337 : vector<1x1xf32>
    %339 = arith.addf %336, %338 : vector<1x1xf32>
    %340 = tpu.reciprocal %339 {approx = true} : vector<1x1xf32> -> vector<1x1xf32>
    %341 = arith.mulf %336, %340 : vector<1x1xf32>
    %342 = arith.mulf %338, %340 : vector<1x1xf32>
    %343 = vector.extract_strided_slice %308 {offsets = [0, 24], sizes = [1, 8], strides = [1, 1]} : vector<2x32xf32> to vector<1x8xf32>
    %344 = vector.extract_strided_slice %308 {offsets = [1, 8], sizes = [1, 8], strides = [1, 1]} : vector<2x32xf32> to vector<1x8xf32>
    %345 = arith.mulf %344, %343 : vector<1x8xf32>
    %346 = vector.shape_cast %345 : vector<1x8xf32> to vector<1x1x8xf32>
    %cst_70 = arith.constant dense<0.000000e+00> : vector<1xf32>
    %347 = vector.multi_reduction <add>, %346, %cst_70 [1, 2] : vector<1x1x8xf32> to vector<1xf32>
    %348 = vector.shape_cast %347 : vector<1xf32> to vector<1x1x1xf32>
    %349 = vector.extract %348[0, 0, 0] : f32 from vector<1x1x1xf32>
    %350 = vector.broadcast %349 : f32 to vector<1x1xf32>
    %cst_71 = arith.constant 0.353553385 : f32
    %351 = vector.broadcast %cst_71 : f32 to vector<1x1xf32>
    %352 = arith.mulf %350, %351 : vector<1x1xf32>
    %353 = vector.extract_strided_slice %308 {offsets = [1, 8], sizes = [1, 8], strides = [1, 1]} : vector<2x32xf32> to vector<1x8xf32>
    %354 = arith.mulf %353, %343 : vector<1x8xf32>
    %355 = vector.shape_cast %354 : vector<1x8xf32> to vector<1x1x8xf32>
    %cst_72 = arith.constant dense<0.000000e+00> : vector<1xf32>
    %356 = vector.multi_reduction <add>, %355, %cst_72 [1, 2] : vector<1x1x8xf32> to vector<1xf32>
    %357 = vector.shape_cast %356 : vector<1xf32> to vector<1x1x1xf32>
    %358 = vector.extract %357[0, 0, 0] : f32 from vector<1x1x1xf32>
    %359 = vector.broadcast %358 : f32 to vector<1x1xf32>
    %cst_73 = arith.constant 0.353553385 : f32
    %360 = vector.broadcast %cst_73 : f32 to vector<1x1xf32>
    %361 = arith.mulf %359, %360 : vector<1x1xf32>
    %362 = arith.maximumf %352, %361 : vector<1x1xf32>
    %363 = arith.subf %352, %362 : vector<1x1xf32>
    %364 = math.exp %363 : vector<1x1xf32>
    %365 = arith.subf %361, %362 : vector<1x1xf32>
    %366 = math.exp %365 : vector<1x1xf32>
    %367 = arith.addf %364, %366 : vector<1x1xf32>
    %368 = tpu.reciprocal %367 {approx = true} : vector<1x1xf32> -> vector<1x1xf32>
    %369 = arith.mulf %364, %368 : vector<1x1xf32>
    %370 = arith.mulf %366, %368 : vector<1x1xf32>
    %371 = vector.extract_strided_slice %309 {offsets = [0, 2], sizes = [8, 1], strides = [1, 1]} : vector<8x4xf32> to vector<8x1xf32>
    %372 = vector.extract_strided_slice %314 {offsets = [0, 0], sizes = [1, 8], strides = [1, 1]} : vector<2x8xf32> to vector<1x8xf32>
    %373 = vector.broadcast %371 : vector<8x1xf32> to vector<8x8xf32>
    %374 = vector.broadcast %372 : vector<1x8xf32> to vector<8x8xf32>
    %375 = arith.addf %373, %374 : vector<8x8xf32>
    %cst_74 = arith.constant 0.00999999977 : f32
    %376 = vector.broadcast %cst_74 : f32 to vector<8x8xf32>
    %377 = arith.mulf %376, %375 : vector<8x8xf32>
    %378 = arith.maximumf %375, %377 : vector<8x8xf32>
    %379 = arith.addf %378, %4 : vector<8x8xf32>
    %cst_75 = arith.constant dense<0xFF800000> : vector<8xf32>
    %380 = vector.multi_reduction <maximumf>, %379, %cst_75 [1] : vector<8x8xf32> to vector<8xf32>
    %381 = vector.shape_cast %380 : vector<8xf32> to vector<8x1xf32>
    %382 = vector.broadcast %381 : vector<8x1xf32> to vector<8x8xf32>
    %383 = arith.subf %379, %382 : vector<8x8xf32>
    %384 = math.exp %383 : vector<8x8xf32>
    %cst_76 = arith.constant dense<0.000000e+00> : vector<8xf32>
    %385 = vector.multi_reduction <add>, %384, %cst_76 [1] : vector<8x8xf32> to vector<8xf32>
    %386 = vector.shape_cast %385 : vector<8xf32> to vector<8x1xf32>
    %387 = tpu.reciprocal %386 {approx = true} : vector<8x1xf32> -> vector<8x1xf32>
    %388 = vector.broadcast %387 : vector<8x1xf32> to vector<8x8xf32>
    %389 = arith.mulf %384, %388 : vector<8x8xf32>
    %390 = vector.broadcast %341 : vector<1x1xf32> to vector<8x8xf32>
    %391 = arith.mulf %390, %389 : vector<8x8xf32>
    %392 = arith.addf %378, %5 : vector<8x8xf32>
    %cst_77 = arith.constant dense<0xFF800000> : vector<8xf32>
    %393 = vector.multi_reduction <maximumf>, %392, %cst_77 [1] : vector<8x8xf32> to vector<8xf32>
    %394 = vector.shape_cast %393 : vector<8xf32> to vector<8x1xf32>
    %395 = vector.broadcast %394 : vector<8x1xf32> to vector<8x8xf32>
    %396 = arith.subf %392, %395 : vector<8x8xf32>
    %397 = math.exp %396 : vector<8x8xf32>
    %cst_78 = arith.constant dense<0.000000e+00> : vector<8xf32>
    %398 = vector.multi_reduction <add>, %397, %cst_78 [1] : vector<8x8xf32> to vector<8xf32>
    %399 = vector.shape_cast %398 : vector<8xf32> to vector<8x1xf32>
    %400 = tpu.reciprocal %399 {approx = true} : vector<8x1xf32> -> vector<8x1xf32>
    %401 = vector.broadcast %400 : vector<8x1xf32> to vector<8x8xf32>
    %402 = arith.mulf %397, %401 : vector<8x8xf32>
    %403 = vector.broadcast %342 : vector<1x1xf32> to vector<8x8xf32>
    %404 = arith.mulf %403, %402 : vector<8x8xf32>
    %405 = arith.addf %391, %404 : vector<8x8xf32>
    %406 = vector.extract_strided_slice %309 {offsets = [0, 3], sizes = [8, 1], strides = [1, 1]} : vector<8x4xf32> to vector<8x1xf32>
    %407 = vector.extract_strided_slice %314 {offsets = [1, 0], sizes = [1, 8], strides = [1, 1]} : vector<2x8xf32> to vector<1x8xf32>
    %408 = vector.broadcast %406 : vector<8x1xf32> to vector<8x8xf32>
    %409 = vector.broadcast %407 : vector<1x8xf32> to vector<8x8xf32>
    %410 = arith.addf %408, %409 : vector<8x8xf32>
    %cst_79 = arith.constant 0.00999999977 : f32
    %411 = vector.broadcast %cst_79 : f32 to vector<8x8xf32>
    %412 = arith.mulf %411, %410 : vector<8x8xf32>
    %413 = arith.maximumf %410, %412 : vector<8x8xf32>
    %414 = arith.addf %413, %4 : vector<8x8xf32>
    %cst_80 = arith.constant dense<0xFF800000> : vector<8xf32>
    %415 = vector.multi_reduction <maximumf>, %414, %cst_80 [1] : vector<8x8xf32> to vector<8xf32>
    %416 = vector.shape_cast %415 : vector<8xf32> to vector<8x1xf32>
    %417 = vector.broadcast %416 : vector<8x1xf32> to vector<8x8xf32>
    %418 = arith.subf %414, %417 : vector<8x8xf32>
    %419 = math.exp %418 : vector<8x8xf32>
    %cst_81 = arith.constant dense<0.000000e+00> : vector<8xf32>
    %420 = vector.multi_reduction <add>, %419, %cst_81 [1] : vector<8x8xf32> to vector<8xf32>
    %421 = vector.shape_cast %420 : vector<8xf32> to vector<8x1xf32>
    %422 = tpu.reciprocal %421 {approx = true} : vector<8x1xf32> -> vector<8x1xf32>
    %423 = vector.broadcast %422 : vector<8x1xf32> to vector<8x8xf32>
    %424 = arith.mulf %419, %423 : vector<8x8xf32>
    %425 = vector.broadcast %369 : vector<1x1xf32> to vector<8x8xf32>
    %426 = arith.mulf %425, %424 : vector<8x8xf32>
    %427 = arith.addf %413, %5 : vector<8x8xf32>
    %cst_82 = arith.constant dense<0xFF800000> : vector<8xf32>
    %428 = vector.multi_reduction <maximumf>, %427, %cst_82 [1] : vector<8x8xf32> to vector<8xf32>
    %429 = vector.shape_cast %428 : vector<8xf32> to vector<8x1xf32>
    %430 = vector.broadcast %429 : vector<8x1xf32> to vector<8x8xf32>
    %431 = arith.subf %427, %430 : vector<8x8xf32>
    %432 = math.exp %431 : vector<8x8xf32>
    %cst_83 = arith.constant dense<0.000000e+00> : vector<8xf32>
    %433 = vector.multi_reduction <add>, %432, %cst_83 [1] : vector<8x8xf32> to vector<8xf32>
    %434 = vector.shape_cast %433 : vector<8xf32> to vector<8x1xf32>
    %435 = tpu.reciprocal %434 {approx = true} : vector<8x1xf32> -> vector<8x1xf32>
    %436 = vector.broadcast %435 : vector<8x1xf32> to vector<8x8xf32>
    %437 = arith.mulf %432, %436 : vector<8x8xf32>
    %438 = vector.broadcast %370 : vector<1x1xf32> to vector<8x8xf32>
    %439 = arith.mulf %438, %437 : vector<8x8xf32>
    %440 = arith.addf %426, %439 : vector<8x8xf32>
    %441 = tpu.concatenate %405, %440 in 0 : vector<8x8xf32>, vector<8x8xf32> -> vector<16x8xf32>
    %cst_84 = arith.constant dense<0.000000e+00> : vector<16x16xf32>
    %442 = tpu.matmul %441, %293, %cst_84 {dimension_numbers = #tpu.dot_dimension_numbers<[1], [0], [0], [1], [0, 0, 1, 1], [], []>} : vector<16x8xf32>, vector<8x16xf32>, vector<16x16xf32> -> vector<16x16xf32>
    %443 = vector.extract_strided_slice %442 {offsets = [0, 0], sizes = [8, 16], strides = [1, 1]} : vector<16x16xf32> to vector<8x16xf32>
    %444 = vector.extract_strided_slice %442 {offsets = [8, 0], sizes = [8, 16], strides = [1, 1]} : vector<16x16xf32> to vector<8x16xf32>
    %445 = vector.extract_strided_slice %308 {offsets = [1, 16], sizes = [1, 8], strides = [1, 1]} : vector<2x32xf32> to vector<1x8xf32>
    %446 = vector.extract_strided_slice %308 {offsets = [0, 0], sizes = [1, 8], strides = [1, 1]} : vector<2x32xf32> to vector<1x8xf32>
    %447 = arith.mulf %446, %445 : vector<1x8xf32>
    %448 = vector.shape_cast %447 : vector<1x8xf32> to vector<1x1x8xf32>
    %cst_85 = arith.constant dense<0.000000e+00> : vector<1xf32>
    %449 = vector.multi_reduction <add>, %448, %cst_85 [1, 2] : vector<1x1x8xf32> to vector<1xf32>
    %450 = vector.shape_cast %449 : vector<1xf32> to vector<1x1x1xf32>
    %451 = vector.extract %450[0, 0, 0] : f32 from vector<1x1x1xf32>
    %452 = vector.broadcast %451 : f32 to vector<1x1xf32>
    %cst_86 = arith.constant 0.353553385 : f32
    %453 = vector.broadcast %cst_86 : f32 to vector<1x1xf32>
    %454 = arith.mulf %452, %453 : vector<1x1xf32>
    %455 = vector.extract_strided_slice %308 {offsets = [0, 0], sizes = [1, 8], strides = [1, 1]} : vector<2x32xf32> to vector<1x8xf32>
    %456 = arith.mulf %455, %445 : vector<1x8xf32>
    %457 = vector.shape_cast %456 : vector<1x8xf32> to vector<1x1x8xf32>
    %cst_87 = arith.constant dense<0.000000e+00> : vector<1xf32>
    %458 = vector.multi_reduction <add>, %457, %cst_87 [1, 2] : vector<1x1x8xf32> to vector<1xf32>
    %459 = vector.shape_cast %458 : vector<1xf32> to vector<1x1x1xf32>
    %460 = vector.extract %459[0, 0, 0] : f32 from vector<1x1x1xf32>
    %461 = vector.broadcast %460 : f32 to vector<1x1xf32>
    %cst_88 = arith.constant 0.353553385 : f32
    %462 = vector.broadcast %cst_88 : f32 to vector<1x1xf32>
    %463 = arith.mulf %461, %462 : vector<1x1xf32>
    %464 = arith.maximumf %454, %463 : vector<1x1xf32>
    %465 = arith.subf %454, %464 : vector<1x1xf32>
    %466 = math.exp %465 : vector<1x1xf32>
    %467 = arith.subf %463, %464 : vector<1x1xf32>
    %468 = math.exp %467 : vector<1x1xf32>
    %469 = arith.addf %466, %468 : vector<1x1xf32>
    %470 = tpu.reciprocal %469 {approx = true} : vector<1x1xf32> -> vector<1x1xf32>
    %471 = arith.mulf %466, %470 : vector<1x1xf32>
    %472 = arith.mulf %468, %470 : vector<1x1xf32>
    %473 = vector.extract_strided_slice %308 {offsets = [1, 24], sizes = [1, 8], strides = [1, 1]} : vector<2x32xf32> to vector<1x8xf32>
    %474 = vector.extract_strided_slice %308 {offsets = [0, 8], sizes = [1, 8], strides = [1, 1]} : vector<2x32xf32> to vector<1x8xf32>
    %475 = arith.mulf %474, %473 : vector<1x8xf32>
    %476 = vector.shape_cast %475 : vector<1x8xf32> to vector<1x1x8xf32>
    %cst_89 = arith.constant dense<0.000000e+00> : vector<1xf32>
    %477 = vector.multi_reduction <add>, %476, %cst_89 [1, 2] : vector<1x1x8xf32> to vector<1xf32>
    %478 = vector.shape_cast %477 : vector<1xf32> to vector<1x1x1xf32>
    %479 = vector.extract %478[0, 0, 0] : f32 from vector<1x1x1xf32>
    %480 = vector.broadcast %479 : f32 to vector<1x1xf32>
    %cst_90 = arith.constant 0.353553385 : f32
    %481 = vector.broadcast %cst_90 : f32 to vector<1x1xf32>
    %482 = arith.mulf %480, %481 : vector<1x1xf32>
    %483 = vector.extract_strided_slice %308 {offsets = [0, 8], sizes = [1, 8], strides = [1, 1]} : vector<2x32xf32> to vector<1x8xf32>
    %484 = arith.mulf %483, %473 : vector<1x8xf32>
    %485 = vector.shape_cast %484 : vector<1x8xf32> to vector<1x1x8xf32>
    %cst_91 = arith.constant dense<0.000000e+00> : vector<1xf32>
    %486 = vector.multi_reduction <add>, %485, %cst_91 [1, 2] : vector<1x1x8xf32> to vector<1xf32>
    %487 = vector.shape_cast %486 : vector<1xf32> to vector<1x1x1xf32>
    %488 = vector.extract %487[0, 0, 0] : f32 from vector<1x1x1xf32>
    %489 = vector.broadcast %488 : f32 to vector<1x1xf32>
    %cst_92 = arith.constant 0.353553385 : f32
    %490 = vector.broadcast %cst_92 : f32 to vector<1x1xf32>
    %491 = arith.mulf %489, %490 : vector<1x1xf32>
    %492 = arith.maximumf %482, %491 : vector<1x1xf32>
    %493 = arith.subf %482, %492 : vector<1x1xf32>
    %494 = math.exp %493 : vector<1x1xf32>
    %495 = arith.subf %491, %492 : vector<1x1xf32>
    %496 = math.exp %495 : vector<1x1xf32>
    %497 = arith.addf %494, %496 : vector<1x1xf32>
    %498 = tpu.reciprocal %497 {approx = true} : vector<1x1xf32> -> vector<1x1xf32>
    %499 = arith.mulf %494, %498 : vector<1x1xf32>
    %500 = arith.mulf %496, %498 : vector<1x1xf32>
    %501 = vector.extract_strided_slice %310 {offsets = [0, 2], sizes = [8, 1], strides = [1, 1]} : vector<8x4xf32> to vector<8x1xf32>
    %502 = vector.extract_strided_slice %312 {offsets = [0, 0], sizes = [1, 8], strides = [1, 1]} : vector<2x8xf32> to vector<1x8xf32>
    %503 = vector.broadcast %501 : vector<8x1xf32> to vector<8x8xf32>
    %504 = vector.broadcast %502 : vector<1x8xf32> to vector<8x8xf32>
    %505 = arith.addf %503, %504 : vector<8x8xf32>
    %cst_93 = arith.constant 0.00999999977 : f32
    %506 = vector.broadcast %cst_93 : f32 to vector<8x8xf32>
    %507 = arith.mulf %506, %505 : vector<8x8xf32>
    %508 = arith.maximumf %505, %507 : vector<8x8xf32>
    %509 = arith.addf %508, %2 : vector<8x8xf32>
    %cst_94 = arith.constant dense<0xFF800000> : vector<8xf32>
    %510 = vector.multi_reduction <maximumf>, %509, %cst_94 [1] : vector<8x8xf32> to vector<8xf32>
    %511 = vector.shape_cast %510 : vector<8xf32> to vector<8x1xf32>
    %512 = vector.broadcast %511 : vector<8x1xf32> to vector<8x8xf32>
    %513 = arith.subf %509, %512 : vector<8x8xf32>
    %514 = math.exp %513 : vector<8x8xf32>
    %cst_95 = arith.constant dense<0.000000e+00> : vector<8xf32>
    %515 = vector.multi_reduction <add>, %514, %cst_95 [1] : vector<8x8xf32> to vector<8xf32>
    %516 = vector.shape_cast %515 : vector<8xf32> to vector<8x1xf32>
    %517 = tpu.reciprocal %516 {approx = true} : vector<8x1xf32> -> vector<8x1xf32>
    %518 = vector.broadcast %517 : vector<8x1xf32> to vector<8x8xf32>
    %519 = arith.mulf %514, %518 : vector<8x8xf32>
    %520 = vector.broadcast %471 : vector<1x1xf32> to vector<8x8xf32>
    %521 = arith.mulf %520, %519 : vector<8x8xf32>
    %522 = arith.addf %508, %3 : vector<8x8xf32>
    %cst_96 = arith.constant dense<0xFF800000> : vector<8xf32>
    %523 = vector.multi_reduction <maximumf>, %522, %cst_96 [1] : vector<8x8xf32> to vector<8xf32>
    %524 = vector.shape_cast %523 : vector<8xf32> to vector<8x1xf32>
    %525 = vector.broadcast %524 : vector<8x1xf32> to vector<8x8xf32>
    %526 = arith.subf %522, %525 : vector<8x8xf32>
    %527 = math.exp %526 : vector<8x8xf32>
    %cst_97 = arith.constant dense<0.000000e+00> : vector<8xf32>
    %528 = vector.multi_reduction <add>, %527, %cst_97 [1] : vector<8x8xf32> to vector<8xf32>
    %529 = vector.shape_cast %528 : vector<8xf32> to vector<8x1xf32>
    %530 = tpu.reciprocal %529 {approx = true} : vector<8x1xf32> -> vector<8x1xf32>
    %531 = vector.broadcast %530 : vector<8x1xf32> to vector<8x8xf32>
    %532 = arith.mulf %527, %531 : vector<8x8xf32>
    %533 = vector.broadcast %472 : vector<1x1xf32> to vector<8x8xf32>
    %534 = arith.mulf %533, %532 : vector<8x8xf32>
    %535 = arith.addf %521, %534 : vector<8x8xf32>
    %536 = vector.extract_strided_slice %310 {offsets = [0, 3], sizes = [8, 1], strides = [1, 1]} : vector<8x4xf32> to vector<8x1xf32>
    %537 = vector.extract_strided_slice %312 {offsets = [1, 0], sizes = [1, 8], strides = [1, 1]} : vector<2x8xf32> to vector<1x8xf32>
    %538 = vector.broadcast %536 : vector<8x1xf32> to vector<8x8xf32>
    %539 = vector.broadcast %537 : vector<1x8xf32> to vector<8x8xf32>
    %540 = arith.addf %538, %539 : vector<8x8xf32>
    %cst_98 = arith.constant 0.00999999977 : f32
    %541 = vector.broadcast %cst_98 : f32 to vector<8x8xf32>
    %542 = arith.mulf %541, %540 : vector<8x8xf32>
    %543 = arith.maximumf %540, %542 : vector<8x8xf32>
    %544 = arith.addf %543, %2 : vector<8x8xf32>
    %cst_99 = arith.constant dense<0xFF800000> : vector<8xf32>
    %545 = vector.multi_reduction <maximumf>, %544, %cst_99 [1] : vector<8x8xf32> to vector<8xf32>
    %546 = vector.shape_cast %545 : vector<8xf32> to vector<8x1xf32>
    %547 = vector.broadcast %546 : vector<8x1xf32> to vector<8x8xf32>
    %548 = arith.subf %544, %547 : vector<8x8xf32>
    %549 = math.exp %548 : vector<8x8xf32>
    %cst_100 = arith.constant dense<0.000000e+00> : vector<8xf32>
    %550 = vector.multi_reduction <add>, %549, %cst_100 [1] : vector<8x8xf32> to vector<8xf32>
    %551 = vector.shape_cast %550 : vector<8xf32> to vector<8x1xf32>
    %552 = tpu.reciprocal %551 {approx = true} : vector<8x1xf32> -> vector<8x1xf32>
    %553 = vector.broadcast %552 : vector<8x1xf32> to vector<8x8xf32>
    %554 = arith.mulf %549, %553 : vector<8x8xf32>
    %555 = vector.broadcast %499 : vector<1x1xf32> to vector<8x8xf32>
    %556 = arith.mulf %555, %554 : vector<8x8xf32>
    %557 = arith.addf %543, %3 : vector<8x8xf32>
    %cst_101 = arith.constant dense<0xFF800000> : vector<8xf32>
    %558 = vector.multi_reduction <maximumf>, %557, %cst_101 [1] : vector<8x8xf32> to vector<8xf32>
    %559 = vector.shape_cast %558 : vector<8xf32> to vector<8x1xf32>
    %560 = vector.broadcast %559 : vector<8x1xf32> to vector<8x8xf32>
    %561 = arith.subf %557, %560 : vector<8x8xf32>
    %562 = math.exp %561 : vector<8x8xf32>
    %cst_102 = arith.constant dense<0.000000e+00> : vector<8xf32>
    %563 = vector.multi_reduction <add>, %562, %cst_102 [1] : vector<8x8xf32> to vector<8xf32>
    %564 = vector.shape_cast %563 : vector<8xf32> to vector<8x1xf32>
    %565 = tpu.reciprocal %564 {approx = true} : vector<8x1xf32> -> vector<8x1xf32>
    %566 = vector.broadcast %565 : vector<8x1xf32> to vector<8x8xf32>
    %567 = arith.mulf %562, %566 : vector<8x8xf32>
    %568 = vector.broadcast %500 : vector<1x1xf32> to vector<8x8xf32>
    %569 = arith.mulf %568, %567 : vector<8x8xf32>
    %570 = arith.addf %556, %569 : vector<8x8xf32>
    %571 = tpu.concatenate %535, %570 in 0 : vector<8x8xf32>, vector<8x8xf32> -> vector<16x8xf32>
    %cst_103 = arith.constant dense<0.000000e+00> : vector<16x16xf32>
    %572 = tpu.matmul %571, %294, %cst_103 {dimension_numbers = #tpu.dot_dimension_numbers<[1], [0], [0], [1], [0, 0, 1, 1], [], []>} : vector<16x8xf32>, vector<8x16xf32>, vector<16x16xf32> -> vector<16x16xf32>
    %573 = vector.extract_strided_slice %572 {offsets = [0, 0], sizes = [8, 16], strides = [1, 1]} : vector<16x16xf32> to vector<8x16xf32>
    %574 = vector.extract_strided_slice %572 {offsets = [8, 0], sizes = [8, 16], strides = [1, 1]} : vector<16x16xf32> to vector<8x16xf32>
    %575 = tpu.concatenate %443, %444 in 1 : vector<8x16xf32>, vector<8x16xf32> -> vector<8x32xf32>
    %576 = tpu.concatenate %573, %574 in 1 : vector<8x16xf32>, vector<8x16xf32> -> vector<8x32xf32>
    %577 = tpu.concatenate %575, %576 in 0 : vector<8x32xf32>, vector<8x32xf32> -> vector<16x32xf32>
    %cst_104 = arith.constant dense<0.000000e+00> : vector<16x16xf32>
    %578 = tpu.matmul %577, %297, %cst_104 {dimension_numbers = #tpu.dot_dimension_numbers<[1], [0], [0], [1], [0, 0, 1, 1], [], []>} : vector<16x32xf32>, vector<32x16xf32>, vector<16x16xf32> -> vector<16x16xf32>
    %579 = vector.broadcast %298 : vector<1x16xf32> to vector<16x16xf32>
    %580 = arith.addf %578, %579 : vector<16x16xf32>
    %581 = vector.extract_strided_slice %580 {offsets = [0, 0], sizes = [8, 16], strides = [1, 1]} : vector<16x16xf32> to vector<8x16xf32>
    %582 = arith.addf %581, %0 : vector<8x16xf32>
    %cst_105 = arith.constant 0.000000e+00 : f32
    %583 = vector.broadcast %cst_105 : f32 to vector<8x112xf32>
    %584 = tpu.concatenate %582, %583 in 1 : vector<8x16xf32>, vector<8x112xf32> -> vector<8x128xf32>
    %c0_106 = arith.constant 0 : index
    %c0_107 = arith.constant 0 : index
    %585 = vector.load %arg1[%c0_106, %c0_107] : memref<8x128xf32, #tpu.memory_space<vmem>>, vector<8x128xf32>
    tpu.vector_store %arg1[%c0_106, %c0_107], %584 {strides = array<i32>} : memref<8x128xf32, #tpu.memory_space<vmem>>, vector<8x128xf32>,
    return
  }
}

</mosaic_0001>

<bundles_post_ra>
// kernel: tpu_custom_call.1
= control target key start
LH: loop header
LB: loop body
LE: loop exit
PB: predicated region body
PF: predicated region fallthrough
CT: control target
= control target key end

     0   :  { %6 = vsyncpa [#allocation3], 0  ;;  %s2319_s0 = inlined_call_operand.hbm [shape: f32[184,128], index: 0, kind: input, shape index: {}]   ;;  %s2320_s1 = inlined_call_operand.hbm [shape: f32[8,128], index: 1, kind: output, shape index: {}]  }
   0x1   :  { %7 = vsyncpa [#allocation4], 0  ;;  %s2040_s6 = smov [#allocation2]   ;;  %s1992_s10 = scalar_lea.hbm %s2319_s0, 2944 }
   0x2   :  { %s13_s7 = sshll.u32 %s2040_s6, 4  ;;  %p1993_p0 = scmp.ne.s32.totalorder %s2319_s0, %s1992_s10  ;;  %s14_s7 = int_to_ptr.vmem [resolvable:$true] %s13_s7 }
   0x3   :  { %p1996_p1 = scmp.lt.u32.totalorder %s1992_s10, %s2319_s0 }
   0x5   :  { %p1998_p2 = pnand %p1996_p1, %p1993_p0 }
   0x7   :  { %2001 = shalt.err (!%p1998_p2)
}
   0x8   :  { %s2002_s15 = scalar_lea.vmem %s14_s7, 2944  ;;  %p2007_p4 = scmp.lt.s32.totalorder %s14_s7, %s14_s7 }
   0x9   :  { %p2003_p3 = scmp.ne.s32.totalorder %s14_s7, %s2002_s15  ;;  %p2008_p5 = scmp.lt.s32.totalorder %s2002_s15, %s2002_s15 }
   0xb   :  { %p2009_p6 = por %p2008_p5, %p2007_p4 }
   0xd   :  { %p2010_p7 = pnand %p2009_p6, %p2003_p3 }
   0xf   :  { %2013 = shalt.err (!%p2010_p7)
}
  0x10   :  { %s2041_s16 = smov 128   ;;  %s2042_s17 = smov 8  }
  0x11   :  { %19 = dma.hbm_to_vmem [thread:$0]  %s2319_s0, 2944, %s14_s7, [#allocation3], %s2041_s16, %s2041_s16, %s2042_s17  }
  0x12   :  { %2036 = dma.done.wait [#allocation3], 2944  }
  0x13   :  { %2037 = vsyncadd [#allocation3], 4294964352  ;;  %v2043_v0 = vmov 0.0|0.0   ;;  %vm2044_vm0 = vmmov 0   ;;  %v2045_v1 = vmov 0.0   ;;  %vm38_vm1 = vcmask 130048  }
  0x14   :  { %1825 = vmatprep.subr.bf16.mxu1 %v2043_v0  ;;  %1745 = vmatprep.mubr.msk.f32.mxu1 %vm2044_vm0, %v2045_v1  ;;  %v31_v2 = vld [vmem:[#allocation2 + $0x50] sm:$0xff]  ;;  %v32_v3 = vld [vmem:[#allocation2 + $0x58] sm:$0xff]  ;;  %v2080_v4 = vld [vmem:[#allocation2] sm:$0xff]  ;;  %vm56_vm2 = vcmask 1040384   ;;  %v2046_v27 = vmov 3   ;;  %v2047_v28 = vmov 2   ;;  %v395_v43 = vlaneseq }
  0x15   :  { %1831 = vmatprep.subr.bf16.mxu0 %v2043_v0  ;;  %1759 = vmatprep.mubr.msk.f32.mxu0 %vm2044_vm0, %v2045_v1  ;;  %v1826_v5 = vpack.c.bf16 %v32_v3, %v31_v2  ;;  %v24_v6 = vld [vmem:[#allocation2 + $0x8] sm:$0xff]  ;;  %v39_v7 = vsel %vm38_vm1, %v2080_v4, 0.0  ;;  %v29_v8 = vld [vmem:[#allocation2 + $0x30] sm:$0xff]  ;;  %v30_v9 = vld [vmem:[#allocation2 + $0x38] sm:$0xff]  ;;  %s2048_s0 = smov 112   ;;  %s2049_s20 = smov 120  }
  0x16   :  { %v40_v10 = vrot.slane %v39_v7, 4  ;;  %v48_v11 = vsel %vm38_vm1, %v24_v6, 0.0  ;;  %v1829_v12 = vpack.c.bf16 %v30_v9, %v29_v8  ;;  %1888 = vset.pattern.permute.xlu1 %v2046_v27  ;;  %1887 = vset.pattern.permute.xlu0 %v2047_v28  ;;  %v396_v46 = vshrl.u32 %v395_v43, 7  ;;  %v2120_v59 = vld [vmem:[#allocation2 + $0x10] sm:$0xff]  ;;  %v2122_v60 = vld [vmem:[#allocation2 + $0x18] sm:$0xff]  ;;  %s2050_s25 = smov 16  }
  0x17   :  { %1827 = vmatpush3.bf16.msra.mxu1 %v1826_v5  ;;  %v49_v13 = vrot.slane %v48_v11, 4  ;;  %vm403_vm3 = vcmask 64512   ;;  %vm350_vm4 = vcmask 57344   ;;  %vm766_vm5 = vcmask 261120   ;;  %s2051_s30 = smov [#allocation5]  }
  0x18   :  { %v41_v14 = vadd.f32 %v40_v10, %v39_v7  ;;  %1833 = vmatpush3.bf16.msra.mxu0 %v1829_v12  ;;  %1828 = vmatprep.subr.bf16.mxu1 %v2043_v0  ;;  %v2114_v48 = vsub.s32 0, %v396_v46  ;;  %v2116_v49 = vsub.s32 1, %v396_v46  ;;  %s1670_s2 = sshll.u32 %s2051_s30, 4  ;;  %s1671_s2 = int_to_ptr.vmem [resolvable:$true] %s1670_s2 }
  0x19   :  { %v50_v15 = vadd.f32 %v49_v13, %v48_v11  ;;  %1767 = vmatprep.subr.mxu0 %v2080_v4  ;;  %s2014_s3 = scalar_lea.vmem %s1671_s2, 128  ;;  %p2019_p9 = scmp.lt.s32.totalorder %s1671_s2, %s1671_s2 }
  0x1a   :  { %v42_v16 = vrot.slane %v41_v14, 2  ;;  %p2015_p8 = scmp.ne.s32.totalorder %s1671_s2, %s2014_s3  ;;  %p2020_p10 = scmp.lt.s32.totalorder %s2014_s3, %s2014_s3 }
  0x1b   :  { %v51_v17 = vrot.slane %v50_v15, 2  ;;  %1760 = vmatmul.mubr.msk.f32.vlgmr.msra.gmra.mrb[0].mxu0 %vm38_vm1, %v24_v6 }
  0x1c   :  { %v43_v18 = vadd.f32 %v42_v16, %v41_v14  ;;  %1768 = vmatpush3.msra.mxu0 %v2080_v4  ;;  %p2021_p11 = por %p2020_p10, %p2019_p9 }
  0x1d   :  { %v52_v19 = vadd.f32 %v51_v17, %v50_v15  ;;  %1842 = vmatprep.subr.bf16.mxu0 %v2043_v0  ;;  %v2137_v17 = vld [vmem:[#allocation2 + $0x28] sm:$0xff] }
  0x1e   :  { %v44_v20 = vrot.slane %v43_v18, 1  ;;  %p2022_p12 = pnand %p2021_p11, %p2015_p8 }
  0x1f   :  { %v53_v21 = vrot.slane %v52_v19, 1 }
  0x20   :  { %v45_v22 = vadd.f32 %v44_v20, %v43_v18  ;;  %v2139_v18 = vld [vmem:[#allocation2 + $0x20] sm:$0xff] }
  0x21   :  { %v54_v23 = vadd.f32 %v53_v21, %v52_v19 }
  0x22   :  { %v47_v24 = vmul.f32 0.125, %v45_v22 }
  0x23   :  { %v55_v25 = vmul.f32 0.125, %v54_v23 }
  0x25   :  { %v57_v26 = vsel %vm56_vm2, %v47_v24, %v55_v25 }
  0x26   :  { %1746 = vmatmul.mubr.msk.f32.vlgmr.msra.gmra.mrb[0].mxu1 %vm38_vm1, %v57_v26 }
  0x27   :  { %1830 = vmatpush3.bf16.msra.mxu1 %v1829_v12  ;;  %1752 = vmatprep.mubr.msk.f32.mxu1 %vm2044_vm0, %v2045_v1 }
  0x28   :  { %1762 = vmatprep.subr.mxu1 %v24_v6 }
  0x2a   :  { %1753 = vmatmul.mubr.msk.f32.vlgmr.msra.gmra.mrb[2].mxu1 %vm38_vm1, %v2080_v4 }
  0x2b   :  { %1763 = vmatpush3.msra.mxu1 %v24_v6 }
  0xee   :  { %v273_v29 = vpop.f32.mrb[0].mxu0 }
  0xef   :  { %634 = vperm.xlu1 %1888, %v273_v29   ;;  %v1761_v30 = vpop.f32.mrb[1].mxu0 }
  0xf3   :  { %1889 = vset.pattern.permute.xlu1 %v2047_v28 }
  0xf9   :  { %v127_v31 = vpop.f32.mrb[0].mxu1 }
  0xfa   :  { %v1747_v32 = vpop.f32.mrb[1].mxu1  ;;  %v342_v33 = vrot.slane %v127_v31, 7  ;;  %v549_v35 = vrot.slane %v127_v31, 1 }
  0xfc   :  { %343 = vrot.lane.b32.xlu0 %v342_v33, %s2048_s0 }
  0xfd   :  { %v200_v34 = vpop.f32.mrb[2].mxu1 }
  0xfe   :  { %392 = vperm.xlu1 %1889, %v200_v34   ;;  %v1754_v36 = vpop.f32.mrb[3].mxu1 }
 0x100   :  { %550 = vrot.lane.b32.xlu0 %v549_v35, %s2048_s0 }
 0x102   :  { %1890 = vset.pattern.permute.xlu1 %v2046_v27 }
 0x103   :  { %431 = vperm.xlu1 %1890, %v200_v34  }
 0x104   :  { %596 = vperm.xlu0 %1887, %v273_v29  }
 0x16e   :  { %v344_v37 = vpop.permute.xlu0 %343  ;;  %v635_v42 = vpop.permute.xlu1 %634 }
 0x16f   :  { %v2102_v38 = vmul.f32 %v344_v37, %v127_v31 }
 0x171   :  { %v348_v39 = vrot.slane %v2102_v38, 1 }
 0x172   :  { %v551_v40 = vpop.permute.xlu0 %550 }
 0x173   :  { %v2105_v41 = vmul.f32 %v551_v40, %v127_v31  ;;  %369 = vrot.lane.b32.xlu1 %v348_v39, %s2049_s20  ;;  %v351_v32 = vsel %vm350_vm4, %v348_v39, 0.0 }
 0x175   :  { %573 = vrot.lane.b32.xlu0 %v2105_v41, %s2049_s20 }
 0x17d   :  { %v393_v45 = vpop.permute.xlu1 %392 }
 0x182   :  { %v432_v50 = vpop.permute.xlu1 %431 }
 0x183   :  { %v597_v44 = vpop.permute.xlu0 %596 }
 0x193   :  { %277 = vxpose.xlu0.b32.start.end [1/1] (short) (narrow) %v200_v34, 8  ;;  %v554_v34 = vsel %vm350_vm4, %v2105_v41, 0.0 }
 0x19c   :  { %309 = vxpose.xlu1.b32.start.end [1/1] (short) (narrow) %v273_v29, 8 }
 0x1ba   :  { %1891 = vset.pattern.permute.xlu1 %v2047_v28 }
 0x1bc   :  { %1894 = vset.pattern.permute.xlu0 %v2046_v27 }
 0x1e5   :  { %v370_v56 = vpop.permute.xlu1 %369 }
 0x1e6   :  { %v372_v31 = vsel %vm350_vm4, %v370_v56, 0.0 }
 0x1e7   :  { %v574_v47 = vpop.permute.xlu0 %573 }
 0x1e8   :  { %v576_v33 = vsel %vm350_vm4, %v574_v47, 0.0 }
 0x213   :  { %v293_v51 = vpop.trf.xlu0 }
 0x214   :  { %v602_v52 = vrot.slane %v293_v51, %v2114_v48  ;;  %v640_v53 = vrot.slane %v293_v51, %v2116_v49 }
 0x216   :  { %v603_v54 = vadd.f32 %v602_v52, %v597_v44  ;;  %v641_v55 = vadd.f32 %v640_v53, %v635_v42 }
 0x218   :  { %v604_v57 = vmul.f32 0.01, %v603_v54  ;;  %v642_v58 = vmul.f32 0.01, %v641_v55 }
 0x21a   :  { %v605_v61 = vmax.f32 %v603_v54, %v604_v57  ;;  %v643_v62 = vmax.f32 %v641_v55, %v642_v58 }
 0x21c   :  { %v325_v63 = vpop.trf.xlu1  ;;  %v606_v2 = vadd.f32 %v605_v61, %v2120_v59  ;;  %v619_v3 = vadd.f32 %v605_v61, %v2122_v60  ;;  %v644_v9 = vadd.f32 %v643_v62, %v2120_v59  ;;  %v2132_v10 = vadd.f32 %v643_v62, %v2122_v60 }
 0x21d   :  { %v398_v5 = vrot.slane %v325_v63, %v2114_v48  ;;  %v437_v6 = vrot.slane %v325_v63, %v2116_v49 }
 0x21e   :  { %v607_v7 = vsel %vm403_vm3, %v606_v2, -inf  ;;  %v620_v8 = vsel %vm403_vm3, %v619_v3, -inf  ;;  %v645_v15 = vsel %vm403_vm3, %v644_v9, -inf  ;;  %v658_v16 = vsel %vm403_vm3, %v2132_v10, -inf }
 0x21f   :  { %v399_v11 = vadd.f32 %v398_v5, %v393_v45  ;;  %v438_v12 = vadd.f32 %v437_v6, %v432_v50  ;;  %608 = vmax.xlane.f32.xlu0 %v607_v7  ;;  %621 = vmax.xlane.f32.xlu1 %v620_v8 }
 0x221   :  { %v400_v13 = vmul.f32 0.01, %v399_v11  ;;  %v439_v14 = vmul.f32 0.01, %v438_v12 }
 0x223   :  { %646 = vmax.xlane.f32.xlu0 %v645_v15  ;;  %659 = vmax.xlane.f32.xlu1 %v658_v16  ;;  %v401_v19 = vmax.f32 %v399_v11, %v400_v13  ;;  %v440_v20 = vmax.f32 %v438_v12, %v439_v14 }
 0x225   :  { %v416_v21 = vadd.f32 %v401_v19, %v2137_v17  ;;  %v402_v22 = vadd.f32 %v401_v19, %v2139_v18  ;;  %v454_v25 = vadd.f32 %v440_v20, %v2137_v17  ;;  %v441_v26 = vadd.f32 %v440_v20, %v2139_v18 }
 0x227   :  { %v417_v23 = vsel %vm403_vm3, %v416_v21, -inf  ;;  %v404_v24 = vsel %vm403_vm3, %v402_v22, -inf  ;;  %v455_v29 = vsel %vm403_vm3, %v454_v25, -inf  ;;  %v442_v30 = vsel %vm403_vm3, %v441_v26, -inf }
 0x228   :  { %418 = vmax.xlane.f32.xlu1 %v417_v23  ;;  %405 = vmax.xlane.f32.xlu0 %v404_v24 }
 0x22c   :  { %456 = vmax.xlane.f32.xlu1 %v455_v29  ;;  %443 = vmax.xlane.f32.xlu0 %v442_v30 }
 0x230   :  { %373 = vadd.xlane.f32.xlu1 %v372_v31  ;;  %352 = vadd.xlane.f32.xlu0 %v351_v32 }
 0x234   :  { %577 = vadd.xlane.f32.xlu1 %v576_v33  ;;  %555 = vadd.xlane.f32.xlu0 %v554_v34 }
 0x2ac   :  { %v609_v35 = vpop.xlane.xlu0 %608  ;;  %v622_v36 = vpop.xlane.xlu1 %621 }
 0x2ad   :  { %v610_v37 = vsub.f32 %v606_v2, %v609_v35  ;;  %v623_v40 = vsub.f32 %v619_v3, %v622_v36 }
 0x2af   :  { %v611_v42 = vmul.f32 1.442695, %v610_v37  ;;  %v624_v43 = vmul.f32 1.442695, %v623_v40 }
 0x2b0   :  { %v647_v44 = vpop.xlane.xlu0 %646  ;;  %v660_v45 = vpop.xlane.xlu1 %659 }
 0x2b1   :  { %1895 = vpow2.f32 %v611_v42  ;;  %v648_v47 = vsub.f32 %v644_v9, %v647_v44  ;;  %v661_v41 = vsub.f32 %v2132_v10, %v660_v45 }
 0x2b2   :  { %1897 = vpow2.f32 %v624_v43 }
 0x2b3   :  { %v649_v58 = vmul.f32 1.442695, %v648_v47  ;;  %v662_v3 = vmul.f32 1.442695, %v661_v41 }
 0x2b5   :  { %v406_v38 = vpop.xlane.xlu0 %405  ;;  %v419_v39 = vpop.xlane.xlu1 %418 }
 0x2b6   :  { %v407_v46 = vsub.f32 %v402_v22, %v406_v38  ;;  %v420_v50 = vsub.f32 %v416_v21, %v419_v39 }
 0x2b8   :  { %v408_v51 = vmul.f32 1.442695, %v407_v46  ;;  %v421_v52 = vmul.f32 1.442695, %v420_v50 }
 0x2b9   :  { %v444_v53 = vpop.xlane.xlu0 %443  ;;  %v457_v54 = vpop.xlane.xlu1 %456 }
 0x2ba   :  { %1899 = vpow2.f32 %v408_v51  ;;  %v445_v55 = vsub.f32 %v441_v26, %v444_v53  ;;  %v458_v56 = vsub.f32 %v454_v25, %v457_v54 }
 0x2bb   :  { %v2157_v57 = vpop.eup %1895  ;;  %1901 = vpow2.f32 %v421_v52 }
 0x2bc   :  { %v2159_v61 = vpop.eup %1897  ;;  %v446_v62 = vmul.f32 1.442695, %v445_v55  ;;  %v459_v63 = vmul.f32 1.442695, %v458_v56  ;;  %v613_v2 = vsel %vm403_vm3, %v2157_v57, 0.0 }
 0x2bd   :  { %614 = vadd.xlane.f32.xlu0 %v613_v2  ;;  %v353_v5 = vpop.xlane.xlu0 %352  ;;  %v626_v6 = vsel %vm403_vm3, %v2159_v61, 0.0  ;;  %v374_v7 = vpop.xlane.xlu1 %373 }
 0x2be   :  { %1903 = vpow2.f32 %v446_v62  ;;  %v354_v8 = vrot.slane %v353_v5, 4  ;;  %627 = vadd.xlane.f32.xlu1 %v626_v6  ;;  %v375_v9 = vrot.slane %v374_v7, 4 }
 0x2bf   :  { %1905 = vpow2.f32 %v459_v63 }
 0x2c0   :  { %1907 = vpow2.f32 %v649_v58  ;;  %v355_v10 = vadd.f32 %v354_v8, %v353_v5  ;;  %v376_v11 = vadd.f32 %v375_v9, %v374_v7 }
 0x2c1   :  { %1909 = vpow2.f32 %v662_v3  ;;  %v556_v12 = vpop.xlane.xlu0 %555  ;;  %v578_v13 = vpop.xlane.xlu1 %577 }
 0x2c2   :  { %v356_v14 = vrot.slane %v355_v10, 2  ;;  %v377_v15 = vrot.slane %v376_v11, 2  ;;  %v557_v16 = vrot.slane %v556_v12, 4  ;;  %v579_v19 = vrot.slane %v578_v13, 4 }
 0x2c4   :  { %v2165_v20 = vpop.eup %1899  ;;  %v558_v21 = vadd.f32 %v557_v16, %v556_v12  ;;  %v580_v22 = vadd.f32 %v579_v19, %v578_v13  ;;  %v357_v23 = vadd.f32 %v356_v14, %v355_v10  ;;  %v378_v24 = vadd.f32 %v377_v15, %v376_v11 }
 0x2c5   :  { %v2167_v25 = vpop.eup %1901  ;;  %v410_v26 = vsel %vm403_vm3, %v2165_v20, 0.0 }
 0x2c6   :  { %v559_v29 = vrot.slane %v558_v21, 2  ;;  %v581_v30 = vrot.slane %v580_v22, 2  ;;  %411 = vadd.xlane.f32.xlu0 %v410_v26  ;;  %v423_v31 = vsel %vm403_vm3, %v2167_v25, 0.0  ;;  %v358_v32 = vrot.slane %v357_v23, 1 }
 0x2c7   :  { %424 = vadd.xlane.f32.xlu1 %v423_v31  ;;  %v379_v33 = vrot.slane %v378_v24, 1 }
 0x2c8   :  { %v2173_v34 = vpop.eup %1903  ;;  %v359_v35 = vadd.f32 %v358_v32, %v357_v23  ;;  %v560_v36 = vadd.f32 %v559_v29, %v558_v21  ;;  %v582_v37 = vadd.f32 %v581_v30, %v580_v22 }
 0x2c9   :  { %v2175_v40 = vpop.eup %1905  ;;  %v448_v42 = vsel %vm403_vm3, %v2173_v34, 0.0  ;;  %v380_v43 = vadd.f32 %v379_v33, %v378_v24 }
 0x2ca   :  { %v2179_v44 = vpop.eup %1907  ;;  %449 = vadd.xlane.f32.xlu0 %v448_v42  ;;  %1859 = vpush %v359_v35  ;;  %v461_v45 = vsel %vm403_vm3, %v2175_v40, 0.0  ;;  %v561_v38 = vrot.slane %v560_v36, 1  ;;  %v583_v39 = vrot.slane %v582_v37, 1 }
 0x2cb   :  { %v2183_v46 = vpop.eup %1909  ;;  %462 = vadd.xlane.f32.xlu1 %v461_v45  ;;  %1861 = vpush %v380_v43  ;;  %v651_v51 = vsel %vm403_vm3, %v2179_v44, 0.0 }
 0x2cc   :  { %v562_v50 = vadd.f32 %v561_v38, %v560_v36  ;;  %v584_v47 = vadd.f32 %v583_v39, %v582_v37  ;;  %v664_v52 = vsel %vm403_vm3, %v2183_v46, 0.0 }
 0x2ce   :  { %652 = vadd.xlane.f32.xlu0 %v651_v51  ;;  %1863 = vpush %v562_v50 }
 0x2cf   :  { %665 = vadd.xlane.f32.xlu1 %v664_v52  ;;  %1865 = vpush %v584_v47 }
 0x2fb   :  { %s1860_s21 = spop %1859 }
 0x2fc   :  { %s1862_s22 = spop %1861  ;;  %v361_v55 = vstv %s1860_s21 }
 0x2fd   :  { %v362_v58 = vmul.f32 0.35355338, %v361_v55  ;;  %v382_v62 = vstv %s1862_s22 }
 0x2fe   :  { %v383_v2 = vmul.f32 0.35355338, %v382_v62 }
 0x2ff   :  { %s1864_s23 = spop %1863  ;;  %v363_v63 = vsub.f32 %v362_v58, %v362_v58 }
 0x300   :  { %v564_v41 = vstv %s1864_s23  ;;  %s1866_s24 = spop %1865  ;;  %v384_v7 = vsub.f32 %v383_v2, %v383_v2 }
 0x301   :  { %v565_v53 = vmul.f32 0.35355338, %v564_v41  ;;  %v586_v3 = vstv %s1866_s24  ;;  %v364_v6 = vmul.f32 1.442695, %v363_v63 }
 0x302   :  { %v587_v5 = vmul.f32 0.35355338, %v586_v3  ;;  %v385_v9 = vmul.f32 1.442695, %v384_v7 }
 0x303   :  { %v566_v54 = vsub.f32 %v565_v53, %v565_v53 }
 0x304   :  { %v588_v8 = vsub.f32 %v587_v5, %v587_v5 }
 0x305   :  { %v567_v56 = vmul.f32 1.442695, %v566_v54 }
 0x306   :  { %v589_v11 = vmul.f32 1.442695, %v588_v8 }
 0x307   :  { %1911 = vpow2.f32 %v567_v56 }
 0x308   :  { %1913 = vpow2.f32 %v364_v6 }
 0x309   :  { %1915 = vpow2.f32 %v385_v9 }
 0x30a   :  { %1917 = vpow2.f32 %v589_v11 }
 0x311   :  { %v1912_v10 = vpop.eup %1911 }
 0x312   :  { %v569_v12 = vadd.f32 %v1912_v10, %v1912_v10  ;;  %v1914_v14 = vpop.eup %1913 }
 0x313   :  { %v366_v16 = vadd.f32 %v1914_v14, %v1914_v14  ;;  %v1916_v19 = vpop.eup %1915 }
 0x314   :  { %1919 = vrcp.f32 %v569_v12  ;;  %v1918_v21 = vpop.eup %1917  ;;  %v387_v22 = vadd.f32 %v1916_v19, %v1916_v19 }
 0x315   :  { %v591_v31 = vadd.f32 %v1918_v21, %v1918_v21 }
 0x31e   :  { %v1920_v23 = vpop.eup %1919 }
 0x31f   :  { %v571_v32 = vmul.f32 %v1920_v23, %v1912_v10 }
 0x34a   :  { %v615_v13 = vpop.xlane.xlu0 %614 }
 0x34b   :  { %1921 = vrcp.f32 %v615_v13  ;;  %v628_v15 = vpop.xlane.xlu1 %627  ;;  %v34_v13 = vld [vmem:[#allocation2 + $0x78] sm:$0xff] }
 0x34c   :  { %1923 = vrcp.f32 %v628_v15  ;;  %v35_v15 = vld [vmem:[#allocation2 + $0x80] sm:$0xff] }
 0x34d   :  { %1925 = vrcp.f32 %v366_v16 }
 0x353   :  { %v412_v24 = vpop.xlane.xlu0 %411 }
 0x354   :  { %1927 = vrcp.f32 %v412_v24  ;;  %v425_v26 = vpop.xlane.xlu1 %424 }
 0x355   :  { %v1922_v29 = vpop.eup %1921  ;;  %1929 = vrcp.f32 %v425_v26 }
 0x356   :  { %v1924_v30 = vpop.eup %1923  ;;  %1931 = vrcp.f32 %v387_v22  ;;  %v617_v33 = vmul.f32 %v1922_v29, %v2157_v57 }
 0x357   :  { %v450_v35 = vpop.xlane.xlu0 %449  ;;  %v630_v36 = vmul.f32 %v1924_v30, %v2159_v61  ;;  %v1926_v39 = vpop.eup %1925  ;;  %v849_v30 = vld [vmem:[#allocation2 + $0x40] sm:$0xff] }
 0x358   :  { %1933 = vrcp.f32 %v450_v35  ;;  %v463_v37 = vpop.xlane.xlu1 %462  ;;  %v618_v42 = vmul.f32 %v617_v33, %v571_v32  ;;  %v368_v57 = vmul.f32 %v1926_v39, %v1914_v14  ;;  %v851_v33 = vld [vmem:[#allocation2 + $0x60] sm:$0xff]  ;;  %v852_v35 = vld [vmem:[#allocation2 + $0x68] sm:$0xff] }
 0x359   :  { %1935 = vrcp.f32 %v463_v37  ;;  %v631_v43 = vmul.f32 %v630_v36, %v571_v32  ;;  %v1843_v36 = vpack.c.bf16 %v852_v35, %v851_v33  ;;  %v1686_v37 = vld [vmem:[#allocation2 + $0xb0] ss:$0 sm:$0xff] }
 0x35a   :  { %1937 = vrcp.f32 %v591_v31  ;;  %v850_v31 = vld [vmem:[#allocation2 + $0x48] sm:$0xff] }
 0x35b   :  { %v653_v45 = vpop.xlane.xlu0 %652  ;;  %v632_v38 = vadd.f32 %v631_v43, %v618_v42  ;;  %v1846_v32 = vpack.c.bf16 %v850_v31, %v849_v30 }
 0x35c   :  { %1939 = vrcp.f32 %v653_v45  ;;  %v666_v50 = vpop.xlane.xlu1 %665 }
 0x35d   :  { %1941 = vrcp.f32 %v666_v50  ;;  %1769 = vmatprep.mubr.msk.f32.mxu0 %vm403_vm3, %v632_v38 }
 0x35e   :  { %v1928_v47 = vpop.eup %1927 }
 0x35f   :  { %v1930_v51 = vpop.eup %1929  ;;  %v414_v52 = vmul.f32 %v1928_v47, %v2165_v20 }
 0x360   :  { %v1932_v61 = vpop.eup %1931  ;;  %v427_v41 = vmul.f32 %v1930_v51, %v2167_v25 }
 0x361   :  { %v415_v53 = vmul.f32 %v414_v52, %v368_v57  ;;  %v389_v58 = vmul.f32 %v1932_v61, %v1916_v19 }
 0x362   :  { %v1934_v54 = vpop.eup %1933  ;;  %v428_v55 = vmul.f32 %v427_v41, %v368_v57 }
 0x363   :  { %v1936_v56 = vpop.eup %1935  ;;  %v452_v62 = vmul.f32 %v1934_v54, %v2173_v34 }
 0x364   :  { %v1938_v63 = vpop.eup %1937  ;;  %v465_v2 = vmul.f32 %v1936_v56, %v2175_v40  ;;  %v429_v3 = vadd.f32 %v428_v55, %v415_v53  ;;  %v33_v40 = vld [vmem:[#allocation2 + $0x70] sm:$0xff] }
 0x365   :  { %v453_v5 = vmul.f32 %v452_v62, %v389_v58  ;;  %v593_v8 = vmul.f32 %v1938_v63, %v1918_v21  ;;  %v1834_v14 = vpack.c.bf16 %v34_v13, %v33_v40 }
 0x366   :  { %v1940_v6 = vpop.eup %1939  ;;  %v466_v7 = vmul.f32 %v465_v2, %v389_v58  ;;  %1764 = vmatprep.mubr.msk.f32.mxu1 %vm403_vm3, %v429_v3 }
 0x367   :  { %v1942_v20 = vpop.eup %1941  ;;  %v655_v25 = vmul.f32 %v1940_v6, %v2179_v44  ;;  %1835 = vmatprep.subr.bf16.mxu1 %v1834_v14  ;;  %v36_v44 = vld [vmem:[#allocation2 + $0x88] sm:$0xff] }
 0x368   :  { %v668_v9 = vmul.f32 %v1942_v20, %v2183_v46  ;;  %v467_v10 = vadd.f32 %v466_v7, %v453_v5  ;;  %v1838_v16 = vpack.c.bf16 %v36_v44, %v35_v15 }
 0x369   :  { %v656_v11 = vmul.f32 %v655_v25, %v593_v8 }
 0x36a   :  { %v669_v12 = vmul.f32 %v668_v9, %v593_v8  ;;  %1765 = vmatmul.mubr.msk.f32.vlgmr.msra.gmra.mrb[4].mxu1 %vm403_vm3, %v467_v10 }
 0x36b   :  { %1837 = vmatpush3.bf16.msra.mxu1 %v1834_v14 }
 0x36c   :  { %v670_v34 = vadd.f32 %v669_v12, %v656_v11  ;;  %1839 = vmatprep.subr.bf16.mxu1 %v1838_v16 }
 0x36e   :  { %1770 = vmatmul.mubr.msk.f32.vlgmr.msra.gmra.mrb[2].mxu0 %vm403_vm3, %v670_v34 }
 0x36f   :  { %1787 = vmatprep.mubr.msk.f32.mxu0 %vm2044_vm0, %v2045_v1  ;;  %1841 = vmatpush3.bf16.msra.mxu1 %v1838_v16 }
 0x370   :  { %1848 = vmatprep.subr.bf16.mxu1 %v2043_v0  ;;  %1844 = vmatpush3.bf16.msra.mxu0 %v1843_v36 }
 0x371   :  { %1845 = vmatprep.subr.bf16.mxu0 %v2043_v0 }
 0x43d   :  { %v1766_v46 = vpop.f32.mrb[4].mxu1 }
 0x43e   :  { %753 = vrot.lane.b32.xlu0 %v1766_v46, %s2050_s25  ;;  %v540_v19 = vpop.f32.mrb[5].mxu1 }
 0x441   :  { %v1771_v21 = vpop.f32.mrb[2].mxu0 }
 0x442   :  { %758 = vrot.lane.b32.xlu1 %v1771_v21, %s2050_s25  ;;  %v743_v22 = vpop.f32.mrb[3].mxu0 }
 0x4b0   :  { %v754_v23 = vpop.permute.xlu0 %753 }
 0x4b1   :  { %v756_v24 = vsel %vm38_vm1, %v540_v19, %v754_v23 }
 0x4b2   :  { %1780 = vmatprep.mubr.msk.f32.mxu1 %vm766_vm5, %v756_v24 }
 0x4b4   :  { %v759_v26 = vpop.permute.xlu1 %758 }
 0x4b5   :  { %v761_v29 = vsel %vm38_vm1, %v743_v22, %v759_v26 }
 0x4b6   :  { %1781 = vmatmul.mubr.msk.f32.vlgmr.msra.gmra.mrb[6].mxu1 %vm766_vm5, %v761_v29 }
 0x4b7   :  { %1801 = vmatprep.mubr.msk.f32.mxu1 %vm2044_vm0, %v2045_v1  ;;  %1850 = vmatpush3.bf16.msra.mxu1 %v1846_v32 }
 0x589   :  { %v1782_v42 = vpop.f32.mrb[6].mxu1 }
 0x58a   :  { %v845_v43 = vadd.f32 %v1782_v42, %v1686_v37  ;;  %v839_v45 = vpop.f32.mrb[7].mxu1 }
 0x58b   :  { %v840_v38 = vadd.f32 %v1686_v37, %v839_v45 }
 0x58c   :  { %v866_v39 = vsel %vm38_vm1, %v845_v43, 0.0  ;;  %1802 = vmatmul.mubr.msk.f32.vlgmr.msra.gmra.mrb[8].mxu1 %vm38_vm1, %v845_v43 }
 0x58d   :  { %v867_v50 = vrot.slane %v866_v39, 4  ;;  %v848_v47 = vadd.f32 %v840_v38, %v2080_v4 }
 0x58f   :  { %v868_v51 = vadd.f32 %v867_v50, %v866_v39  ;;  %v858_v57 = vsel %vm38_vm1, %v848_v47, 0.0  ;;  %1809 = vmatprep.subr.mxu1 %v848_v47 }
 0x590   :  { %v859_v52 = vrot.slane %v858_v57, 4  ;;  %1810 = vmatpush3.msra.mxu1 %v848_v47 }
 0x591   :  { %v869_v61 = vrot.slane %v868_v51, 2 }
 0x592   :  { %v860_v0 = vadd.f32 %v859_v52, %v858_v57 }
 0x593   :  { %v870_v41 = vadd.f32 %v869_v61, %v868_v51 }
 0x594   :  { %v861_v53 = vrot.slane %v860_v0, 2 }
 0x595   :  { %v871_v54 = vrot.slane %v870_v41, 1 }
 0x596   :  { %v862_v55 = vadd.f32 %v861_v53, %v860_v0 }
 0x597   :  { %v872_v58 = vadd.f32 %v871_v54, %v870_v41 }
 0x598   :  { %v863_v56 = vrot.slane %v862_v55, 1 }
 0x599   :  { %v873_v2 = vmul.f32 0.125, %v872_v58 }
 0x59a   :  { %v864_v62 = vadd.f32 %v863_v56, %v862_v55 }
 0x59c   :  { %v865_v63 = vmul.f32 0.125, %v864_v62 }
 0x59e   :  { %v874_v3 = vsel %vm56_vm2, %v865_v63, %v873_v2 }
 0x59f   :  { %1788 = vmatmul.mubr.msk.f32.vlgmr.msra.gmra.mrb[4].mxu0 %vm38_vm1, %v874_v3 }
 0x5a0   :  { %1847 = vmatpush3.bf16.msra.mxu0 %v1846_v32  ;;  %1794 = vmatprep.mubr.msk.f32.mxu0 %vm2044_vm0, %v2045_v1 }
 0x5a1   :  { %1804 = vmatprep.subr.mxu0 %v845_v43 }
 0x5a3   :  { %1795 = vmatmul.mubr.msk.f32.vlgmr.msra.gmra.mrb[6].mxu0 %vm38_vm1, %v848_v47 }
 0x5a4   :  { %1805 = vmatpush3.msra.mxu0 %v845_v43 }
 0x65f   :  { %v1090_v4 = vpop.f32.mrb[8].mxu1 }
 0x660   :  { %v1803_v5 = vpop.f32.mrb[9].mxu1 }
 0x672   :  { %v944_v6 = vpop.f32.mrb[4].mxu0 }
 0x673   :  { %v1789_v7 = vpop.f32.mrb[5].mxu0  ;;  %v1364_v20 = vrot.slane %v944_v6, 1  ;;  %v1159_v8 = vrot.slane %v944_v6, 7 }
 0x675   :  { %1365 = vrot.lane.b32.xlu0 %v1364_v20, %s2048_s0  ;;  %1160 = vrot.lane.b32.xlu1 %v1159_v8, %s2048_s0 }
 0x676   :  { %v1017_v25 = vpop.f32.mrb[6].mxu0 }
 0x677   :  { %v1796_v9 = vpop.f32.mrb[7].mxu0 }
 0x679   :  { %1411 = vperm.xlu1 %1891, %v1090_v4   ;;  %1246 = vperm.xlu0 %1894, %v1017_v25  }
 0x67d   :  { %1892 = vset.pattern.permute.xlu1 %v2046_v27 }
 0x67e   :  { %1449 = vperm.xlu1 %1892, %v1090_v4  }
 0x682   :  { %1893 = vset.pattern.permute.xlu1 %v2047_v28 }
 0x683   :  { %1208 = vperm.xlu1 %1893, %v1017_v25  }
 0x6e7   :  { %v1366_v1 = vpop.permute.xlu0 %1365  ;;  %v1161_v10 = vpop.permute.xlu1 %1160 }
 0x6e8   :  { %v1368_v11 = vmul.f32 %v1366_v1, %v944_v6  ;;  %v1163_v12 = vmul.f32 %v1161_v10, %v944_v6 }
 0x6ea   :  { %v1165_v34 = vrot.slane %v1163_v12, 1  ;;  %1388 = vrot.lane.b32.xlu1 %v1368_v11, %s2049_s20  ;;  %v1369_v54 = vsel %vm350_vm4, %v1368_v11, 0.0 }
 0x6ec   :  { %1185 = vrot.lane.b32.xlu0 %v1165_v34, %s2049_s20  ;;  %v1167_v0 = vsel %vm350_vm4, %v1165_v34, 0.0 }
 0x6f8   :  { %v1412_v40 = vpop.permute.xlu1 %1411  ;;  %v1247_v14 = vpop.permute.xlu0 %1246 }
 0x6fd   :  { %v1450_v13 = vpop.permute.xlu1 %1449 }
 0x702   :  { %v1209_v27 = vpop.permute.xlu1 %1208 }
 0x70a   :  { %1126 = vxpose.xlu0.b32.start.end [1/1] (short) (narrow) %v1090_v4, 8 }
 0x713   :  { %1094 = vxpose.xlu1.b32.start.end [1/1] (short) (narrow) %v1017_v25, 8 }
 0x75c   :  { %v1389_v16 = vpop.permute.xlu1 %1388 }
 0x75e   :  { %v1186_v15 = vpop.permute.xlu0 %1185 }
 0x75f   :  { %v1188_v55 = vsel %vm350_vm4, %v1186_v15, 0.0 }
 0x78a   :  { %v1142_v44 = vpop.trf.xlu0 }
 0x78b   :  { %v1214_v28 = vrot.slane %v1142_v44, %v2114_v48  ;;  %v1252_v23 = vrot.slane %v1142_v44, %v2116_v49 }
 0x78d   :  { %v1215_v22 = vadd.f32 %v1214_v28, %v1209_v27  ;;  %v1253_v32 = vadd.f32 %v1252_v23, %v1247_v14 }
 0x78f   :  { %v1216_v31 = vmul.f32 0.01, %v1215_v22  ;;  %v1254_v42 = vmul.f32 0.01, %v1253_v32 }
 0x791   :  { %v1217_v43 = vmax.f32 %v1215_v22, %v1216_v31  ;;  %v1255_v39 = vmax.f32 %v1253_v32, %v1254_v42 }
 0x793   :  { %v1110_v46 = vpop.trf.xlu1  ;;  %v1218_v51 = vadd.f32 %v1217_v43, %v2139_v18  ;;  %v1231_v57 = vadd.f32 %v1217_v43, %v2137_v17  ;;  %v1269_v41 = vadd.f32 %v1255_v39, %v2137_v17 }
 0x794   :  { %v1417_v19 = vrot.slane %v1110_v46, %v2114_v48  ;;  %v1455_v21 = vrot.slane %v1110_v46, %v2116_v49 }
 0x795   :  { %v1219_v52 = vsel %vm403_vm3, %v1218_v51, -inf  ;;  %v1270_v53 = vsel %vm403_vm3, %v1269_v41, -inf }
 0x796   :  { %v1418_v24 = vadd.f32 %v1417_v19, %v1412_v40  ;;  %v1456_v26 = vadd.f32 %v1455_v21, %v1450_v13 }
 0x798   :  { %v1419_v29 = vmul.f32 0.01, %v1418_v24  ;;  %v1457_v30 = vmul.f32 0.01, %v1456_v26 }
 0x79a   :  { %v1420_v33 = vmax.f32 %v1418_v24, %v1419_v29  ;;  %v1458_v35 = vmax.f32 %v1456_v26, %v1457_v30 }
 0x79c   :  { %v1434_v36 = vadd.f32 %v1420_v33, %v2122_v60  ;;  %v1421_v37 = vadd.f32 %v1420_v33, %v2120_v59  ;;  %v2237_v49 = vadd.f32 %v1458_v35, %v2122_v60  ;;  %v1459_v38 = vadd.f32 %v1458_v35, %v2120_v59 }
 0x79d   :  { %v1232_v60 = vsel %vm403_vm3, %v1231_v57, -inf  ;;  %v1256_v59 = vadd.f32 %v1255_v39, %v2139_v18  ;;  %v1391_v18 = vsel %vm350_vm4, %v1389_v16, 0.0 }
 0x79e   :  { %v1435_v48 = vsel %vm403_vm3, %v1434_v36, -inf  ;;  %v1422_v45 = vsel %vm403_vm3, %v1421_v37, -inf  ;;  %v1473_v50 = vsel %vm403_vm3, %v2237_v49, -inf  ;;  %v1460_v47 = vsel %vm403_vm3, %v1459_v38, -inf }
 0x79f   :  { %1436 = vmax.xlane.f32.xlu0 %v1435_v48  ;;  %1423 = vmax.xlane.f32.xlu1 %v1422_v45  ;;  %v1257_v61 = vsel %vm403_vm3, %v1256_v59, -inf }
 0x7a3   :  { %1474 = vmax.xlane.f32.xlu0 %v1473_v50  ;;  %1461 = vmax.xlane.f32.xlu1 %v1460_v47 }
 0x7a7   :  { %1220 = vmax.xlane.f32.xlu0 %v1219_v52  ;;  %1233 = vmax.xlane.f32.xlu1 %v1232_v60 }
 0x7ab   :  { %1258 = vmax.xlane.f32.xlu0 %v1257_v61  ;;  %1168 = vadd.xlane.f32.xlu1 %v1167_v0 }
 0x7af   :  { %1271 = vmax.xlane.f32.xlu0 %v1270_v53  ;;  %1370 = vadd.xlane.f32.xlu1 %v1369_v54 }
 0x7b3   :  { %1189 = vadd.xlane.f32.xlu0 %v1188_v55 }
 0x7b7   :  { %1392 = vadd.xlane.f32.xlu0 %v1391_v18 }
 0x82c   :  { %v1437_v56 = vpop.xlane.xlu0 %1436  ;;  %v1424_v58 = vpop.xlane.xlu1 %1423 }
 0x82d   :  { %v1438_v62 = vsub.f32 %v1434_v36, %v1437_v56  ;;  %v1425_v63 = vsub.f32 %v1421_v37, %v1424_v58 }
 0x82f   :  { %v1439_v2 = vmul.f32 1.442695, %v1438_v62  ;;  %v1426_v17 = vmul.f32 1.442695, %v1425_v63 }
 0x830   :  { %v1475_v3 = vpop.xlane.xlu0 %1474  ;;  %v1462_v4 = vpop.xlane.xlu1 %1461 }
 0x831   :  { %1943 = vpow2.f32 %v1439_v2  ;;  %v1463_v8 = vsub.f32 %v1459_v38, %v1462_v4  ;;  %v1476_v34 = vsub.f32 %v2237_v49, %v1475_v3 }
 0x832   :  { %1945 = vpow2.f32 %v1426_v17 }
 0x833   :  { %v1464_v13 = vmul.f32 1.442695, %v1463_v8  ;;  %v1477_v22 = vmul.f32 1.442695, %v1476_v34 }
 0x834   :  { %v1221_v5 = vpop.xlane.xlu0 %1220  ;;  %v1234_v6 = vpop.xlane.xlu1 %1233 }
 0x835   :  { %v1222_v7 = vsub.f32 %v1218_v51, %v1221_v5  ;;  %v1235_v20 = vsub.f32 %v1231_v57, %v1234_v6 }
 0x837   :  { %v1223_v25 = vmul.f32 1.442695, %v1222_v7  ;;  %v1236_v9 = vmul.f32 1.442695, %v1235_v20 }
 0x838   :  { %v1259_v1 = vpop.xlane.xlu0 %1258  ;;  %v1169_v10 = vpop.xlane.xlu1 %1168 }
 0x839   :  { %1947 = vpow2.f32 %v1223_v25  ;;  %v1260_v11 = vsub.f32 %v1256_v59, %v1259_v1  ;;  %v1170_v12 = vrot.slane %v1169_v10, 4 }
 0x83a   :  { %1949 = vpow2.f32 %v1236_v9 }
 0x83b   :  { %v2256_v40 = vpop.eup %1943  ;;  %v1261_v14 = vmul.f32 1.442695, %v1260_v11  ;;  %v1171_v15 = vadd.f32 %v1170_v12, %v1169_v10 }
 0x83c   :  { %v2258_v27 = vpop.eup %1945  ;;  %v1272_v44 = vpop.xlane.xlu0 %1271  ;;  %v1441_v28 = vsel %vm403_vm3, %v2256_v40, 0.0 }
 0x83d   :  { %v1371_v16 = vpop.xlane.xlu1 %1370  ;;  %1951 = vpow2.f32 %v1261_v14  ;;  %v1172_v46 = vrot.slane %v1171_v15, 2  ;;  %v1273_v19 = vsub.f32 %v1269_v41, %v1272_v44  ;;  %1442 = vadd.xlane.f32.xlu0 %v1441_v28  ;;  %v1428_v23 = vsel %vm403_vm3, %v2258_v27, 0.0 }
 0x83e   :  { %v1372_v21 = vrot.slane %v1371_v16, 4  ;;  %1953 = vpow2.f32 %v1464_v13  ;;  %1429 = vadd.xlane.f32.xlu1 %v1428_v23 }
 0x83f   :  { %v1274_v24 = vmul.f32 1.442695, %v1273_v19  ;;  %v1173_v29 = vadd.f32 %v1172_v46, %v1171_v15 }
 0x840   :  { %v1373_v26 = vadd.f32 %v1372_v21, %v1371_v16  ;;  %v1190_v30 = vpop.xlane.xlu0 %1189 }
 0x841   :  { %1955 = vpow2.f32 %v1274_v24  ;;  %v1191_v32 = vrot.slane %v1190_v30, 4  ;;  %v1174_v33 = vrot.slane %v1173_v29, 1 }
 0x842   :  { %v1374_v31 = vrot.slane %v1373_v26, 2  ;;  %1957 = vpow2.f32 %v1477_v22 }
 0x843   :  { %v2264_v35 = vpop.eup %1947  ;;  %v1192_v36 = vadd.f32 %v1191_v32, %v1190_v30  ;;  %v1175_v37 = vadd.f32 %v1174_v33, %v1173_v29 }
 0x844   :  { %v2266_v42 = vpop.eup %1949  ;;  %v1393_v43 = vpop.xlane.xlu0 %1392  ;;  %v1225_v48 = vsel %vm403_vm3, %v2264_v35, 0.0  ;;  %v1375_v45 = vadd.f32 %v1374_v31, %v1373_v26 }
 0x845   :  { %v1193_v49 = vrot.slane %v1192_v36, 2  ;;  %v1394_v38 = vrot.slane %v1393_v43, 4  ;;  %1226 = vadd.xlane.f32.xlu1 %v1225_v48  ;;  %v1238_v39 = vsel %vm403_vm3, %v2266_v42, 0.0  ;;  %1867 = vpush %v1175_v37 }
 0x846   :  { %1239 = vadd.xlane.f32.xlu0 %v1238_v39  ;;  %v1376_v52 = vrot.slane %v1375_v45, 1 }
 0x847   :  { %v2272_v50 = vpop.eup %1951  ;;  %v1395_v47 = vadd.f32 %v1394_v38, %v1393_v43  ;;  %v1194_v51 = vadd.f32 %v1193_v49, %v1192_v36 }
 0x848   :  { %v1263_v57 = vsel %vm403_vm3, %v2272_v50, 0.0  ;;  %v2276_v60 = vpop.eup %1953  ;;  %v1377_v18 = vadd.f32 %v1376_v52, %v1375_v45 }
 0x849   :  { %v1396_v59 = vrot.slane %v1395_v47, 2  ;;  %1264 = vadd.xlane.f32.xlu1 %v1263_v57  ;;  %v1195_v61 = vrot.slane %v1194_v51, 1  ;;  %v1466_v54 = vsel %vm403_vm3, %v2276_v60, 0.0 }
 0x84b   :  { %v2278_v0 = vpop.eup %1955  ;;  %v1196_v41 = vadd.f32 %v1195_v61, %v1194_v51  ;;  %v1397_v53 = vadd.f32 %v1396_v59, %v1395_v47 }
 0x84c   :  { %v1276_v55 = vsel %vm403_vm3, %v2278_v0, 0.0  ;;  %v2284_v56 = vpop.eup %1957 }
 0x84d   :  { %1467 = vadd.xlane.f32.xlu1 %v1466_v54  ;;  %1277 = vadd.xlane.f32.xlu0 %v1276_v55  ;;  %1869 = vpush %v1196_v41  ;;  %v1398_v58 = vrot.slane %v1397_v53, 1  ;;  %v1479_v63 = vsel %vm403_vm3, %v2284_v56, 0.0 }
 0x84e   :  { %1871 = vpush %v1377_v18 }
 0x84f   :  { %v1399_v62 = vadd.f32 %v1398_v58, %v1397_v53 }
 0x851   :  { %1480 = vadd.xlane.f32.xlu0 %v1479_v63  ;;  %1873 = vpush %v1399_v62 }
 0x876   :  { %s1868_s26 = spop %1867 }
 0x877   :  { %v1177_v4 = vstv %s1868_s26 }
 0x878   :  { %v1178_v5 = vmul.f32 0.35355338, %v1177_v4 }
 0x87a   :  { %v1179_v7 = vsub.f32 %v1178_v5, %v1178_v5 }
 0x87c   :  { %v1180_v8 = vmul.f32 1.442695, %v1179_v7 }
 0x87e   :  { %s1870_s27 = spop %1869 }
 0x87f   :  { %s1872_s28 = spop %1871  ;;  %v1198_v20 = vstv %s1870_s27 }
 0x880   :  { %v1379_v2 = vstv %s1872_s28  ;;  %v1199_v25 = vmul.f32 0.35355338, %v1198_v20  ;;  %v853_v20 = vld [vmem:[#allocation2 + $0x90] sm:$0xff] }
 0x881   :  { %v1380_v17 = vmul.f32 0.35355338, %v1379_v2 }
 0x882   :  { %s1874_s29 = spop %1873  ;;  %v1200_v1 = vsub.f32 %v1199_v25, %v1199_v25  ;;  %v855_v25 = vld [vmem:[#allocation2 + $0xa0] sm:$0xff] }
 0x883   :  { %v1381_v3 = vsub.f32 %v1380_v17, %v1380_v17  ;;  %v1401_v9 = vstv %s1874_s29 }
 0x884   :  { %v1402_v10 = vmul.f32 0.35355338, %v1401_v9  ;;  %v1201_v12 = vmul.f32 1.442695, %v1200_v1  ;;  %v856_v9 = vld [vmem:[#allocation2 + $0xa8] sm:$0xff] }
 0x885   :  { %v1382_v6 = vmul.f32 1.442695, %v1381_v3 }
 0x886   :  { %v1403_v34 = vsub.f32 %v1402_v10, %v1402_v10 }
 0x887   :  { %1959 = vpow2.f32 %v1382_v6 }
 0x888   :  { %1961 = vpow2.f32 %v1180_v8  ;;  %v1404_v14 = vmul.f32 1.442695, %v1403_v34  ;;  %v854_v8 = vld [vmem:[#allocation2 + $0x98] sm:$0xff] }
 0x889   :  { %1963 = vpow2.f32 %v1201_v12 }
 0x891   :  { %v1960_v11 = vpop.eup %1959 }
 0x892   :  { %v1384_v13 = vadd.f32 %v1960_v11, %v1960_v11  ;;  %v1962_v15 = vpop.eup %1961 }
 0x893   :  { %v1182_v28 = vadd.f32 %v1962_v15, %v1962_v15  ;;  %v1964_v46 = vpop.eup %1963 }
 0x894   :  { %1965 = vrcp.f32 %v1384_v13  ;;  %v1203_v24 = vadd.f32 %v1964_v46, %v1964_v46 }
 0x89e   :  { %v1966_v21 = vpop.eup %1965 }
 0x89f   :  { %v1386_v30 = vmul.f32 %v1966_v21, %v1960_v11 }
 0x8ca   :  { %v1443_v44 = vpop.xlane.xlu0 %1442 }
 0x8cb   :  { %1967 = vrcp.f32 %v1443_v44  ;;  %v1430_v16 = vpop.xlane.xlu1 %1429 }
 0x8cc   :  { %1969 = vpow2.f32 %v1404_v14 }
 0x8cd   :  { %1971 = vrcp.f32 %v1430_v16 }
 0x8ce   :  { %1973 = vrcp.f32 %v1182_v28 }
 0x8d2   :  { %v1227_v19 = vpop.xlane.xlu1 %1226 }
 0x8d3   :  { %v1240_v22 = vpop.xlane.xlu0 %1239  ;;  %1975 = vrcp.f32 %v1227_v19 }
 0x8d4   :  { %1977 = vrcp.f32 %v1240_v22 }
 0x8d5   :  { %v1968_v23 = vpop.eup %1967 }
 0x8d6   :  { %v1970_v26 = vpop.eup %1969  ;;  %v1265_v29 = vpop.xlane.xlu1 %1264  ;;  %v1445_v31 = vmul.f32 %v1968_v23, %v2256_v40 }
 0x8d7   :  { %v1972_v32 = vpop.eup %1971  ;;  %1979 = vrcp.f32 %v1265_v29  ;;  %v1406_v37 = vadd.f32 %v1970_v26, %v1970_v26 }
 0x8d8   :  { %v1432_v33 = vmul.f32 %v1972_v32, %v2258_v27  ;;  %v1446_v36 = vmul.f32 %v1445_v31, %v1386_v30  ;;  %1981 = vrcp.f32 %v1203_v24  ;;  %v1974_v49 = vpop.eup %1973 }
 0x8d9   :  { %v1184_v51 = vmul.f32 %v1974_v49, %v1962_v15  ;;  %v1696_v15 = vld [vmem:[#allocation2 + $0xb1] ss:$0 sm:$0xff] }
 0x8da   :  { %v1278_v43 = vpop.xlane.xlu0 %1277  ;;  %v1468_v48 = vpop.xlane.xlu1 %1467  ;;  %v1433_v45 = vmul.f32 %v1432_v33, %v1386_v30 }
 0x8db   :  { %1983 = vrcp.f32 %v1278_v43 }
 0x8dc   :  { %1985 = vrcp.f32 %v1468_v48  ;;  %v1447_v38 = vadd.f32 %v1446_v36, %v1433_v45 }
 0x8dd   :  { %v1976_v39 = vpop.eup %1975  ;;  %1987 = vrcp.f32 %v1406_v37 }
 0x8de   :  { %v1978_v47 = vpop.eup %1977  ;;  %1811 = vmatprep.mubr.msk.f32.mxu1 %vm403_vm3, %v1447_v38  ;;  %v1481_v40 = vpop.xlane.xlu0 %1480  ;;  %v1229_v57 = vmul.f32 %v1976_v39, %v2264_v35 }
 0x8df   :  { %1989 = vrcp.f32 %v1481_v40  ;;  %v1242_v27 = vmul.f32 %v1978_v47, %v2266_v42 }
 0x8e0   :  { %v1230_v52 = vmul.f32 %v1229_v57, %v1184_v51 }
 0x8e1   :  { %v1980_v59 = vpop.eup %1979  ;;  %v1243_v61 = vmul.f32 %v1242_v27, %v1184_v51 }
 0x8e2   :  { %v1982_v41 = vpop.eup %1981  ;;  %v1267_v54 = vmul.f32 %v1980_v59, %v2272_v50 }
 0x8e3   :  { %v1244_v53 = vadd.f32 %v1243_v61, %v1230_v52  ;;  %v1205_v58 = vmul.f32 %v1982_v41, %v1964_v46  ;;  %v1991_v46 = vld [vmem:[#allocation2] sm:$0xff] }
 0x8e5   :  { %v1984_v55 = vpop.eup %1983  ;;  %1806 = vmatprep.mubr.msk.f32.mxu0 %vm403_vm3, %v1244_v53  ;;  %v1268_v2 = vmul.f32 %v1267_v54, %v1205_v58 }
 0x8e6   :  { %v1986_v18 = vpop.eup %1985  ;;  %v1280_v62 = vmul.f32 %v1984_v55, %v2278_v0  ;;  %v1851_v0 = vpack.c.bf16 %v854_v8, %v853_v20 }
 0x8e7   :  { %v1988_v63 = vpop.eup %1987  ;;  %v1470_v17 = vmul.f32 %v1986_v18, %v2276_v60  ;;  %v1855_v60 = vpack.c.bf16 %v856_v9, %v855_v25 }
 0x8e8   :  { %v1281_v35 = vmul.f32 %v1280_v62, %v1205_v58  ;;  %v1408_v3 = vmul.f32 %v1988_v63, %v1970_v26  ;;  %1852 = vmatprep.subr.bf16.mxu0 %v1851_v0 }
 0x8e9   :  { %v1990_v42 = vpop.eup %1989 }
 0x8ea   :  { %v1483_v4 = vmul.f32 %v1990_v42, %v2284_v56  ;;  %v1282_v5 = vadd.f32 %v1281_v35, %v1268_v2  ;;  %v1471_v6 = vmul.f32 %v1470_v17, %v1408_v3 }
 0x8ec   :  { %v1484_v7 = vmul.f32 %v1483_v4, %v1408_v3  ;;  %1807 = vmatmul.mubr.msk.f32.vlgmr.msra.gmra.mrb[8].mxu0 %vm403_vm3, %v1282_v5 }
 0x8ed   :  { %1854 = vmatpush3.bf16.msra.mxu0 %v1851_v0 }
 0x8ee   :  { %v1485_v50 = vadd.f32 %v1484_v7, %v1471_v6  ;;  %1856 = vmatprep.subr.bf16.mxu0 %v1855_v60 }
 0x8f0   :  { %1812 = vmatmul.mubr.msk.f32.vlgmr.msra.gmra.mrb[10].mxu1 %vm403_vm3, %v1485_v50 }
 0x8f1   :  { %1858 = vmatpush3.bf16.msra.mxu0 %v1855_v60 }
 0x9bf   :  { %v1808_v1 = vpop.f32.mrb[8].mxu0 }
 0x9c0   :  { %1568 = vrot.lane.b32.xlu1 %v1808_v1, %s2050_s25  ;;  %v1355_v56 = vpop.f32.mrb[9].mxu0 }
 0x9c3   :  { %v1813_v10 = vpop.f32.mrb[10].mxu1 }
 0x9c4   :  { %1573 = vrot.lane.b32.xlu0 %v1813_v10, %s2050_s25  ;;  %v1558_v11 = vpop.f32.mrb[11].mxu1 }
 0xa32   :  { %v1569_v12 = vpop.permute.xlu1 %1568 }
 0xa33   :  { %v1571_v34 = vsel %vm38_vm1, %v1355_v56, %v1569_v12 }
 0xa34   :  { %1822 = vmatprep.mubr.msk.f32.mxu0 %vm766_vm5, %v1571_v34 }
 0xa36   :  { %v1574_v13 = vpop.permute.xlu0 %1573 }
 0xa37   :  { %v1576_v14 = vsel %vm38_vm1, %v1558_v11, %v1574_v13 }
 0xa38   :  { %1823 = vmatmul.mubr.msk.f32.vlgmr.msra.gmra.mrb[10].mxu0 %vm766_vm5, %v1576_v14 }
 0xb0b   :  { %v1824_v44 = vpop.f32.mrb[10].mxu0 }
 0xb0c   :  { %v1653_v16 = vpop.f32.mrb[11].mxu0 }
 0xb0d   :  { %v1654_v28 = vadd.f32 %v1696_v15, %v1653_v16 }
 0xb0f   :  { %v1661_v19 = vadd.f32 %v1991_v46, %v1654_v28 }
 0xb11   :  { %v1662_v21 = vsel %vm38_vm1, %v1661_v19, 0.0 }
 0xb12   :  { %1663 = vst [vmem:[#allocation5] sm:$0xff] %v1662_v21 }
 0xb13   :  { %2025 = shalt.err (!%p2022_p12)
}
 0xb14   :  { %s2026_s6 = scalar_lea.hbm %s2320_s1, 128 }
 0xb15   :  { %p2027_p13 = scmp.ne.s32.totalorder %s2320_s1, %s2026_s6  ;;  %p2030_p0 = scmp.lt.u32.totalorder %s2026_s6, %s2320_s1 }
 0xb17   :  { %p2032_p1 = pnand %p2030_p0, %p2027_p13 }
 0xb19   :  { %2035 = shalt.err (!%p2032_p1)
}
 0xb1a   :  { %1673 = dma.vmem_to_hbm [thread:$0]  %s1671_s2, 128, %s2320_s1, [#allocation4]  }
 0xb1b   :  { %2038 = dma.done.wait [#allocation4], 128  }
 0xb1c   :  { %2039 = vsyncadd [#allocation4], 4294967168 }
 0xb1d   :  { %1677 = vsyncpa [#allocation3], 1 }
 0xb1e   :  { %1678 = vsyncpa [#allocation4], 1 }

</bundles_post_ra>
